<compile_context>
chip_gen: v7x
topology: tpu7x:2x2x1
jax: 0.10.0
libtpu: 0.0.40
codegen_flags: <defaults>
</compile_context>

<pallas_src>
import functools
import math

import jax
import jax.numpy as jnp
from jax.experimental import pallas as pl
from jax.experimental.pallas import tpu as pltpu

# ---------------- config (small, consistent with the module) ----------------
B = 2          # batch
T = 8          # sequence length
N_EMBD = 128   # C
N_HEAD = 4
H_DIM = N_EMBD // N_HEAD       # 32
HIDDEN = 4 * N_EMBD            # 512
EPS = float(jnp.finfo(jnp.float32).eps)   # F.rms_norm eps=None -> dtype eps


# ------------------------------- kernel -------------------------------------
def block_kernel(x_ref, mask_ref, hmask_ref,
                 wqkv_ref, bqkv_ref, wo_ref, bo_ref, bug_ref, bd_ref,
                 wug_hbm, wd_hbm,
                 out_ref,
                 wug_v, wd_v, kbd_s, vbd_s, sem,
                 *, n_head):
    # Kick off the MLP-weight fetch immediately so it overlaps the attention
    # branch.  Issued every grid step (not gated on program_id) so it remains
    # correct when the batch grid is sharded across TensorCores on v7x; the
    # redundant re-fetch on later steps is hidden behind attention compute.
    cp_ug = pltpu.make_async_copy(wug_hbm, wug_v, sem.at[0])
    cp_d = pltpu.make_async_copy(wd_hbm, wd_v, sem.at[1])
    cp_ug.start()
    cp_d.start()

    x = x_ref[...].astype(jnp.float32)            # (T, C) -- one batch element
    Tq, C = x.shape
    D = C // n_head

    def rmsnorm(v):
        ms = jnp.mean(v * v, axis=-1, keepdims=True)
        return v * jax.lax.rsqrt(ms + EPS)

    # ---------------- attention branch ----------------
    xn = rmsnorm(x).astype(jnp.bfloat16)
    qkv = jnp.dot(xn, wqkv_ref[...],
                  preferred_element_type=jnp.float32) + bqkv_ref[...]   # (T, 3C)
    q = qkv[:, :C]               # 1/sqrt(h_dim) folded into wq/bq on the host
    k = qkv[:, C:2 * C]
    v = qkv[:, 2 * C:]

    # Block-diagonal per-head K/V layout: row h*T + t holds head h's token t
    # in lanes [h*D, (h+1)*D); built with aligned sub-block stores into
    # zero-initialized f32 scratch (no concatenate / iota / mask multiply).
    kbd_s[...] = jnp.zeros_like(kbd_s)
    vbd_s[...] = jnp.zeros_like(vbd_s)
    for h in range(n_head):                       # static unroll, n_head = 4
        kbd_s[h * Tq:(h + 1) * Tq, h * D:(h + 1) * D] = k[:, h * D:(h + 1) * D]
        vbd_s[h * Tq:(h + 1) * Tq, h * D:(h + 1) * D] = v[:, h * D:(h + 1) * D]

    # All-head scores in one matmul: s[t, h*T + t'] = <q_h[t], k_h[t']>
    s = jax.lax.dot_general(q, kbd_s[...], (((1,), (1,)), ((), ())),
                            preferred_element_type=jnp.float32)          # (T, HM)
    s = s + mask_ref[...]        # host-precomputed additive causal mask

    # A single per-row max across all heads is a valid stabilizer for every
    # head block; per-head normalization comes from the head-mask matmul.
    p = jnp.exp(s - jnp.max(s, axis=-1, keepdims=True))                  # f32
    y_un = jnp.dot(p, vbd_s[...], preferred_element_type=jnp.float32)    # (T, C)
    den = jnp.dot(p, hmask_ref[...], preferred_element_type=jnp.float32) # (T, C)
    y = y_un * pl.reciprocal(den, approx=True)

    attn = jnp.dot(y.astype(jnp.bfloat16), wo_ref[...],
                   preferred_element_type=jnp.float32) + bo_ref[...]
    x1 = x + attn                                                         # residual

    # ---------------- MLP (SwiGLU-style) branch ----------------
    xn2 = rmsnorm(x1).astype(jnp.bfloat16)
    cp_ug.wait()
    cp_d.wait()
    ug = jnp.dot(xn2, wug_v[...],
                 preferred_element_type=jnp.float32) + bug_ref[...]       # (T, 2*HIDDEN)
    hid = ug.shape[-1] // 2
    hidden = (jax.nn.silu(ug[:, :hid]) * ug[:, hid:]).astype(jnp.bfloat16)
    down = jnp.dot(hidden, wd_v[...],
                   preferred_element_type=jnp.float32) + bd_ref[...]

    out_ref[...] = (x1 + down).astype(out_ref.dtype)                      # residual


# ------------------------------- wrapper -------------------------------------
def block_forward(x, params):
    """x: (B, T, C) float32. params: dict of (in,out) weights and (1,out) biases."""
    Bsz, Tlen, C = x.shape
    n_head = N_HEAD
    D = C // n_head
    HM = n_head * Tlen
    hidden = params["wup"].shape[1]
    scale = 1.0 / math.sqrt(D)

    # Host-side packing: fused QKV, fused up|gate, attention scale folded into
    # the q projection, weights cast to bf16 (biases stay f32 and are added
    # after the f32-accumulated matmuls).
    wqkv = jnp.concatenate(
        [params["wq"] * scale, params["wk"], params["wv"]], axis=1).astype(jnp.bfloat16)
    bqkv = jnp.concatenate(
        [params["bq"] * scale, params["bk"], params["bv"]], axis=1)
    wug = jnp.concatenate([params["wup"], params["wg"]], axis=1).astype(jnp.bfloat16)
    bug = jnp.concatenate([params["bup"], params["bg"]], axis=1)
    wo = params["wo"].astype(jnp.bfloat16)
    wd = params["wd"].astype(jnp.bfloat16)

    # Host-precomputed masks (constant across batch and calls).
    causal = jnp.where(jnp.tril(jnp.ones((Tlen, Tlen), dtype=bool)), 0.0, -1e30)
    attn_mask = jnp.tile(causal.astype(jnp.float32), (1, n_head))         # (T, HM)
    head_mask = (jnp.arange(HM)[:, None] // Tlen
                 == jnp.arange(C)[None, :] // D).astype(jnp.float32)      # (HM, C)

    flops = 2 * Bsz * Tlen * (C * 3 * C + 3 * HM * C + C * C
                              + C * 2 * hidden + hidden * C)
    transcendentals = Bsz * Tlen * (HM + hidden + n_head + 2)
    bytes_accessed = int(sum(a.size * a.dtype.itemsize for a in
                             [x, attn_mask, head_mask, wqkv, bqkv, wo,
                              params["bo"], bug, params["bd"], wug, wd])
                         + x.size * x.dtype.itemsize)

    args = [x, attn_mask, head_mask, wqkv, bqkv, wo, params["bo"], bug,
            params["bd"], wug, wd]

    in_specs = [
        pl.BlockSpec((None, Tlen, C), lambda b: (b, 0, 0)),   # x, one batch per step
        pl.BlockSpec(attn_mask.shape, lambda b: (0, 0)),      # additive causal mask
        pl.BlockSpec(head_mask.shape, lambda b: (0, 0)),      # head block mask
        pl.BlockSpec(wqkv.shape, lambda b: (0, 0)),
        pl.BlockSpec(bqkv.shape, lambda b: (0, 0)),
        pl.BlockSpec(wo.shape, lambda b: (0, 0)),
        pl.BlockSpec(params["bo"].shape, lambda b: (0, 0)),
        pl.BlockSpec(bug.shape, lambda b: (0, 0)),
        pl.BlockSpec(params["bd"].shape, lambda b: (0, 0)),
        pl.BlockSpec(memory_space=pl.ANY),                    # wug -> manual DMA
        pl.BlockSpec(memory_space=pl.ANY),                    # wd  -> manual DMA
    ]

    out = pl.pallas_call(
        functools.partial(block_kernel, n_head=n_head),
        out_shape=jax.ShapeDtypeStruct((Bsz, Tlen, C), x.dtype),
        grid_spec=pltpu.PrefetchScalarGridSpec(
            num_scalar_prefetch=0,
            grid=(Bsz,),
            in_specs=in_specs,
            out_specs=pl.BlockSpec((None, Tlen, C), lambda b: (b, 0, 0)),
            scratch_shapes=[
                pltpu.VMEM(wug.shape, jnp.bfloat16),   # wug landing buffer
                pltpu.VMEM(wd.shape, jnp.bfloat16),    # wd landing buffer
                pltpu.VMEM((HM, C), jnp.float32),      # block-diagonal K
                pltpu.VMEM((HM, C), jnp.float32),      # block-diagonal V
                pltpu.SemaphoreType.DMA((2,)),
            ]),
        compiler_params=pltpu.CompilerParams(
            dimension_semantics=("parallel",)),
        cost_estimate=pl.CostEstimate(
            flops=flops,
            transcendentals=transcendentals,
            bytes_accessed=bytes_accessed),
    )(*args)
    return out


# ------------------------- pure-JAX reference --------------------------------
def block_reference(x, params):
    def rmsnorm(v):
        ms = jnp.mean(v * v, axis=-1, keepdims=True)
        return v * jax.lax.rsqrt(ms + EPS)

    xn = rmsnorm(x)
    q = xn @ params["wq"] + params["bq"]
    k = xn @ params["wk"] + params["bk"]
    v = xn @ params["wv"] + params["bv"]
    q = q.reshape(B, T, N_HEAD, H_DIM).transpose(0, 2, 1, 3)
    k = k.reshape(B, T, N_HEAD, H_DIM).transpose(0, 2, 1, 3)
    v = v.reshape(B, T, N_HEAD, H_DIM).transpose(0, 2, 1, 3)
    att = jnp.einsum("bhqd,bhkd->bhqk", q, k) / math.sqrt(H_DIM)
    mask = jnp.tril(jnp.ones((T, T), dtype=bool))
    att = jnp.where(mask[None, None], att, -jnp.inf)
    att = jax.nn.softmax(att, axis=-1)
    y = jnp.einsum("bhqk,bhkd->bhqd", att, v)
    y = y.transpose(0, 2, 1, 3).reshape(B, T, N_EMBD)
    x1 = x + (y @ params["wo"] + params["bo"])

    xn2 = rmsnorm(x1)
    up = xn2 @ params["wup"] + params["bup"]
    gate = xn2 @ params["wg"] + params["bg"]
    down = (jax.nn.silu(up) * gate) @ params["wd"] + params["bd"]
    return x1 + down


# --------------------------------- main ---------------------------------------
if __name__ == "__main__":
    key = jax.random.PRNGKey(0)
    keys = jax.random.split(key, 16)

    def init_w(k, shape, fan_in):
        bound = 1.0 / math.sqrt(fan_in)
        return jax.random.uniform(k, shape, jnp.float32, -bound, bound)

    params = {
        # weights stored as (in_features, out_features)
        "wq": init_w(keys[0], (N_EMBD, N_EMBD), N_EMBD),
        "bq": init_w(keys[1], (1, N_EMBD), N_EMBD),
        "wk": init_w(keys[2], (N_EMBD, N_EMBD), N_EMBD),
        "bk": init_w(keys[3], (1, N_EMBD), N_EMBD),
        "wv": init_w(keys[4], (N_EMBD, N_EMBD), N_EMBD),
        "bv": init_w(keys[5], (1, N_EMBD), N_EMBD),
        "wo": init_w(keys[6], (N_EMBD, N_EMBD), N_EMBD),
        "bo": init_w(keys[7], (1, N_EMBD), N_EMBD),
        "wup": init_w(keys[8], (N_EMBD, HIDDEN), N_EMBD),
        "bup": init_w(keys[9], (1, HIDDEN), N_EMBD),
        "wg": init_w(keys[10], (N_EMBD, HIDDEN), N_EMBD),
        "bg": init_w(keys[11], (1, HIDDEN), N_EMBD),
        "wd": init_w(keys[12], (HIDDEN, N_EMBD), HIDDEN),
        "bd": init_w(keys[13], (1, N_EMBD), HIDDEN),
    }

    x = jax.random.normal(keys[14], (B, T, N_EMBD), jnp.float32)

    out = block_forward(x, params)
    out = jax.block_until_ready(out)

    ref = block_reference(x, params)
    assert out.shape == (B, T, N_EMBD)
    # bf16 projection weights + approx reciprocal -> loosened tolerance vs f32 ref
    assert jnp.allclose(out, ref, atol=3e-2, rtol=3e-2), "mismatch vs reference"

    print("KERNEL_OK")
</pallas_src>

<mosaic_0001>
module attributes {stable_mosaic.version = 11 : i64} {
  func.func @block_kernel(%arg0: i32, %arg1: memref<1x8x128xf32, #tpu.memory_space<vmem>>, %arg2: memref<8x32xf32, #tpu.memory_space<vmem>>, %arg3: memref<32x128xf32, #tpu.memory_space<vmem>>, %arg4: memref<128x384xbf16, #tpu.memory_space<vmem>>, %arg5: memref<1x384xf32, #tpu.memory_space<vmem>>, %arg6: memref<128x128xbf16, #tpu.memory_space<vmem>>, %arg7: memref<1x128xf32, #tpu.memory_space<vmem>>, %arg8: memref<1x1024xf32, #tpu.memory_space<vmem>>, %arg9: memref<1x128xf32, #tpu.memory_space<vmem>>, %arg10: memref<128x1024xbf16, #tpu.memory_space<any>>, %arg11: memref<512x128xbf16, #tpu.memory_space<any>>, %arg12: memref<1x8x128xf32, #tpu.memory_space<vmem>>, %arg13: memref<128x1024xbf16, #tpu.memory_space<vmem>>, %arg14: memref<512x128xbf16, #tpu.memory_space<vmem>>, %arg15: memref<32x128xf32, #tpu.memory_space<vmem>>, %arg16: memref<32x128xf32, #tpu.memory_space<vmem>>, %arg17: memref<2x!tpu.dma_semaphore, #tpu.memory_space<semaphore_mem>>) attributes {dimension_semantics = [#tpu.dimension_semantics<parallel>], iteration_bounds = array<i64: 2>, scalar_prefetch = 0 : i64, scratch_operands = 5 : i64, tpu.core_type = #tpu.core_type<tc>, window_params = [{transform_indices = @transform_0, window_bounds = array<i64: 1, 8, 128>}, {pipeline_mode = #tpu.pipeline_mode<synchronous>, transform_indices = @transform_1, window_bounds = array<i64: 8, 32>}, {pipeline_mode = #tpu.pipeline_mode<synchronous>, transform_indices = @transform_2, window_bounds = array<i64: 32, 128>}, {pipeline_mode = #tpu.pipeline_mode<synchronous>, transform_indices = @transform_3, window_bounds = array<i64: 128, 384>}, {pipeline_mode = #tpu.pipeline_mode<synchronous>, transform_indices = @transform_4, window_bounds = array<i64: 1, 384>}, {pipeline_mode = #tpu.pipeline_mode<synchronous>, transform_indices = @transform_5, window_bounds = array<i64: 128, 128>}, {pipeline_mode = #tpu.pipeline_mode<synchronous>, transform_indices = @transform_6, window_bounds = array<i64: 1, 128>}, {pipeline_mode = #tpu.pipeline_mode<synchronous>, transform_indices = @transform_7, window_bounds = array<i64: 1, 1024>}, {pipeline_mode = #tpu.pipeline_mode<synchronous>, transform_indices = @transform_8, window_bounds = array<i64: 1, 128>}, {}, {}, {transform_indices = @transform_11, window_bounds = array<i64: 1, 8, 128>}]} {
    %c0_i32 = arith.constant 0 : i32
    %0 = tpu.memref_slice %arg17[%c0_i32] : memref<2x!tpu.dma_semaphore, #tpu.memory_space<semaphore_mem>> -> memref<1x!tpu.dma_semaphore, #tpu.memory_space<semaphore_mem>>
    %1 = tpu.memref_squeeze %0 : memref<1x!tpu.dma_semaphore, #tpu.memory_space<semaphore_mem>> -> memref<!tpu.dma_semaphore, #tpu.memory_space<semaphore_mem>>
    tpu.enqueue_dma source(%arg10 : memref<128x1024xbf16, #tpu.memory_space<any>>) target(%arg13 : memref<128x1024xbf16, #tpu.memory_space<vmem>>) target_semaphore(%1 : memref<!tpu.dma_semaphore, #tpu.memory_space<semaphore_mem>>)
    %c1_i32 = arith.constant 1 : i32
    %2 = tpu.memref_slice %arg17[%c1_i32] : memref<2x!tpu.dma_semaphore, #tpu.memory_space<semaphore_mem>> -> memref<1x!tpu.dma_semaphore, #tpu.memory_space<semaphore_mem>>
    %3 = tpu.memref_squeeze %2 : memref<1x!tpu.dma_semaphore, #tpu.memory_space<semaphore_mem>> -> memref<!tpu.dma_semaphore, #tpu.memory_space<semaphore_mem>>
    tpu.enqueue_dma source(%arg11 : memref<512x128xbf16, #tpu.memory_space<any>>) target(%arg14 : memref<512x128xbf16, #tpu.memory_space<vmem>>) target_semaphore(%3 : memref<!tpu.dma_semaphore, #tpu.memory_space<semaphore_mem>>)
    %c0 = arith.constant 0 : index
    %c0_0 = arith.constant 0 : index
    %c0_1 = arith.constant 0 : index
    %4 = vector.load %arg1[%c0, %c0_0, %c0_1] : memref<1x8x128xf32, #tpu.memory_space<vmem>>, vector<1x8x128xf32>
    %5 = vector.shape_cast %4 : vector<1x8x128xf32> to vector<8x128xf32>
    %6 = arith.mulf %5, %5 : vector<8x128xf32>
    %cst = arith.constant dense<0.000000e+00> : vector<8xf32>
    %7 = vector.multi_reduction <add>, %6, %cst [1] : vector<8x128xf32> to vector<8xf32>
    %8 = vector.shape_cast %7 : vector<8xf32> to vector<8x1xf32>
    %cst_2 = arith.constant 1.280000e+02 : f32
    %9 = vector.broadcast %cst_2 : f32 to vector<8x1xf32>
    %10 = arith.divf %8, %9 : vector<8x1xf32>
    %cst_3 = arith.constant 1.1920929E-7 : f32
    %11 = vector.broadcast %cst_3 : f32 to vector<8x1xf32>
    %12 = arith.addf %10, %11 : vector<8x1xf32>
    %13 = math.rsqrt %12 : vector<8x1xf32>
    %14 = vector.broadcast %13 : vector<8x1xf32> to vector<8x128xf32>
    %15 = arith.mulf %5, %14 : vector<8x128xf32>
    %16 = arith.truncf %15 : vector<8x128xf32> to vector<8x128xbf16>
    %c0_4 = arith.constant 0 : index
    %c0_5 = arith.constant 0 : index
    %17 = vector.load %arg4[%c0_4, %c0_5] : memref<128x384xbf16, #tpu.memory_space<vmem>>, vector<128x384xbf16>
    %cst_6 = arith.constant dense<0.000000e+00> : vector<8x384xf32>
    %18 = tpu.matmul %16, %17, %cst_6 {dimension_numbers = #tpu.dot_dimension_numbers<[1], [0], [0], [1], [0, 0, 1, 1], [], []>} : vector<8x128xbf16>, vector<128x384xbf16>, vector<8x384xf32> -> vector<8x384xf32>
    %c0_7 = arith.constant 0 : index
    %c0_8 = arith.constant 0 : index
    %19 = vector.load %arg5[%c0_7, %c0_8] : memref<1x384xf32, #tpu.memory_space<vmem>>, vector<1x384xf32>
    %20 = vector.broadcast %19 : vector<1x384xf32> to vector<8x384xf32>
    %21 = arith.addf %18, %20 : vector<8x384xf32>
    %22 = vector.extract_strided_slice %21 {offsets = [0, 0], sizes = [8, 128], strides = [1, 1]} : vector<8x384xf32> to vector<8x128xf32>
    %23 = vector.extract_strided_slice %21 {offsets = [0, 128], sizes = [8, 128], strides = [1, 1]} : vector<8x384xf32> to vector<8x128xf32>
    %24 = vector.extract_strided_slice %21 {offsets = [0, 256], sizes = [8, 128], strides = [1, 1]} : vector<8x384xf32> to vector<8x128xf32>
    %cst_9 = arith.constant 0.000000e+00 : f32
    %25 = vector.broadcast %cst_9 : f32 to vector<32x128xf32>
    %c0_10 = arith.constant 0 : index
    %c0_11 = arith.constant 0 : index
    %26 = vector.load %arg15[%c0_10, %c0_11] : memref<32x128xf32, #tpu.memory_space<vmem>>, vector<32x128xf32>
    tpu.vector_store %arg15[%c0_10, %c0_11], %25 {strides = array<i32>} : memref<32x128xf32, #tpu.memory_space<vmem>>, vector<32x128xf32>,
    %cst_12 = arith.constant 0.000000e+00 : f32
    %27 = vector.broadcast %cst_12 : f32 to vector<32x128xf32>
    %c0_13 = arith.constant 0 : index
    %c0_14 = arith.constant 0 : index
    %28 = vector.load %arg16[%c0_13, %c0_14] : memref<32x128xf32, #tpu.memory_space<vmem>>, vector<32x128xf32>
    tpu.vector_store %arg16[%c0_13, %c0_14], %27 {strides = array<i32>} : memref<32x128xf32, #tpu.memory_space<vmem>>, vector<32x128xf32>,
    %29 = vector.extract_strided_slice %23 {offsets = [0, 0], sizes = [8, 32], strides = [1, 1]} : vector<8x128xf32> to vector<8x32xf32>
    %c0_15 = arith.constant 0 : index
    %c0_16 = arith.constant 0 : index
    %30 = vector.load %arg15[%c0_15, %c0_16] : memref<32x128xf32, #tpu.memory_space<vmem>>, vector<8x32xf32>
    tpu.vector_store %arg15[%c0_15, %c0_16], %29 {strides = array<i32>} : memref<32x128xf32, #tpu.memory_space<vmem>>, vector<8x32xf32>,
    %31 = vector.extract_strided_slice %24 {offsets = [0, 0], sizes = [8, 32], strides = [1, 1]} : vector<8x128xf32> to vector<8x32xf32>
    %c0_17 = arith.constant 0 : index
    %c0_18 = arith.constant 0 : index
    %32 = vector.load %arg16[%c0_17, %c0_18] : memref<32x128xf32, #tpu.memory_space<vmem>>, vector<8x32xf32>
    tpu.vector_store %arg16[%c0_17, %c0_18], %31 {strides = array<i32>} : memref<32x128xf32, #tpu.memory_space<vmem>>, vector<8x32xf32>,
    %33 = vector.extract_strided_slice %23 {offsets = [0, 32], sizes = [8, 32], strides = [1, 1]} : vector<8x128xf32> to vector<8x32xf32>
    %c8 = arith.constant 8 : index
    %c32 = arith.constant 32 : index
    %34 = vector.load %arg15[%c8, %c32] : memref<32x128xf32, #tpu.memory_space<vmem>>, vector<8x32xf32>
    tpu.vector_store %arg15[%c8, %c32], %33 {strides = array<i32>} : memref<32x128xf32, #tpu.memory_space<vmem>>, vector<8x32xf32>,
    %35 = vector.extract_strided_slice %24 {offsets = [0, 32], sizes = [8, 32], strides = [1, 1]} : vector<8x128xf32> to vector<8x32xf32>
    %c8_19 = arith.constant 8 : index
    %c32_20 = arith.constant 32 : index
    %36 = vector.load %arg16[%c8_19, %c32_20] : memref<32x128xf32, #tpu.memory_space<vmem>>, vector<8x32xf32>
    tpu.vector_store %arg16[%c8_19, %c32_20], %35 {strides = array<i32>} : memref<32x128xf32, #tpu.memory_space<vmem>>, vector<8x32xf32>,
    %37 = vector.extract_strided_slice %23 {offsets = [0, 64], sizes = [8, 32], strides = [1, 1]} : vector<8x128xf32> to vector<8x32xf32>
    %c16 = arith.constant 16 : index
    %c64 = arith.constant 64 : index
    %38 = vector.load %arg15[%c16, %c64] : memref<32x128xf32, #tpu.memory_space<vmem>>, vector<8x32xf32>
    tpu.vector_store %arg15[%c16, %c64], %37 {strides = array<i32>} : memref<32x128xf32, #tpu.memory_space<vmem>>, vector<8x32xf32>,
    %39 = vector.extract_strided_slice %24 {offsets = [0, 64], sizes = [8, 32], strides = [1, 1]} : vector<8x128xf32> to vector<8x32xf32>
    %c16_21 = arith.constant 16 : index
    %c64_22 = arith.constant 64 : index
    %40 = vector.load %arg16[%c16_21, %c64_22] : memref<32x128xf32, #tpu.memory_space<vmem>>, vector<8x32xf32>
    tpu.vector_store %arg16[%c16_21, %c64_22], %39 {strides = array<i32>} : memref<32x128xf32, #tpu.memory_space<vmem>>, vector<8x32xf32>,
    %41 = vector.extract_strided_slice %23 {offsets = [0, 96], sizes = [8, 32], strides = [1, 1]} : vector<8x128xf32> to vector<8x32xf32>
    %c24 = arith.constant 24 : index
    %c96 = arith.constant 96 : index
    %42 = vector.load %arg15[%c24, %c96] : memref<32x128xf32, #tpu.memory_space<vmem>>, vector<8x32xf32>
    tpu.vector_store %arg15[%c24, %c96], %41 {strides = array<i32>} : memref<32x128xf32, #tpu.memory_space<vmem>>, vector<8x32xf32>,
    %43 = vector.extract_strided_slice %24 {offsets = [0, 96], sizes = [8, 32], strides = [1, 1]} : vector<8x128xf32> to vector<8x32xf32>
    %c24_23 = arith.constant 24 : index
    %c96_24 = arith.constant 96 : index
    %44 = vector.load %arg16[%c24_23, %c96_24] : memref<32x128xf32, #tpu.memory_space<vmem>>, vector<8x32xf32>
    tpu.vector_store %arg16[%c24_23, %c96_24], %43 {strides = array<i32>} : memref<32x128xf32, #tpu.memory_space<vmem>>, vector<8x32xf32>,
    %c0_25 = arith.constant 0 : index
    %c0_26 = arith.constant 0 : index
    %45 = vector.load %arg15[%c0_25, %c0_26] : memref<32x128xf32, #tpu.memory_space<vmem>>, vector<32x128xf32>
    %cst_27 = arith.constant dense<0.000000e+00> : vector<8x32xf32>
    %46 = tpu.matmul %22, %45, %cst_27 {dimension_numbers = #tpu.dot_dimension_numbers<[1], [1], [0], [0], [0, 0, 1, 0], [], []>} : vector<8x128xf32>, vector<32x128xf32>, vector<8x32xf32> -> vector<8x32xf32>
    %c0_28 = arith.constant 0 : index
    %c0_29 = arith.constant 0 : index
    %47 = vector.load %arg2[%c0_28, %c0_29] : memref<8x32xf32, #tpu.memory_space<vmem>>, vector<8x32xf32>
    %48 = arith.addf %46, %47 : vector<8x32xf32>
    %cst_30 = arith.constant dense<0xFF800000> : vector<8xf32>
    %49 = vector.multi_reduction <maximumf>, %48, %cst_30 [1] : vector<8x32xf32> to vector<8xf32>
    %50 = vector.shape_cast %49 : vector<8xf32> to vector<8x1xf32>
    %51 = vector.broadcast %50 : vector<8x1xf32> to vector<8x32xf32>
    %52 = arith.subf %48, %51 : vector<8x32xf32>
    %53 = math.exp %52 : vector<8x32xf32>
    %c0_31 = arith.constant 0 : index
    %c0_32 = arith.constant 0 : index
    %54 = vector.load %arg16[%c0_31, %c0_32] : memref<32x128xf32, #tpu.memory_space<vmem>>, vector<32x128xf32>
    %cst_33 = arith.constant dense<0.000000e+00> : vector<8x128xf32>
    %55 = tpu.matmul %53, %54, %cst_33 {dimension_numbers = #tpu.dot_dimension_numbers<[1], [0], [0], [1], [0, 0, 1, 1], [], []>} : vector<8x32xf32>, vector<32x128xf32>, vector<8x128xf32> -> vector<8x128xf32>
    %c0_34 = arith.constant 0 : index
    %c0_35 = arith.constant 0 : index
    %56 = vector.load %arg3[%c0_34, %c0_35] : memref<32x128xf32, #tpu.memory_space<vmem>>, vector<32x128xf32>
    %cst_36 = arith.constant dense<0.000000e+00> : vector<8x128xf32>
    %57 = tpu.matmul %53, %56, %cst_36 {dimension_numbers = #tpu.dot_dimension_numbers<[1], [0], [0], [1], [0, 0, 1, 1], [], []>} : vector<8x32xf32>, vector<32x128xf32>, vector<8x128xf32> -> vector<8x128xf32>
    %58 = tpu.reciprocal %57 {approx = true} : vector<8x128xf32> -> vector<8x128xf32>
    %59 = arith.mulf %55, %58 : vector<8x128xf32>
    %60 = arith.truncf %59 : vector<8x128xf32> to vector<8x128xbf16>
    %c0_37 = arith.constant 0 : index
    %c0_38 = arith.constant 0 : index
    %61 = vector.load %arg6[%c0_37, %c0_38] : memref<128x128xbf16, #tpu.memory_space<vmem>>, vector<128x128xbf16>
    %cst_39 = arith.constant dense<0.000000e+00> : vector<8x128xf32>
    %62 = tpu.matmul %60, %61, %cst_39 {dimension_numbers = #tpu.dot_dimension_numbers<[1], [0], [0], [1], [0, 0, 1, 1], [], []>} : vector<8x128xbf16>, vector<128x128xbf16>, vector<8x128xf32> -> vector<8x128xf32>
    %c0_40 = arith.constant 0 : index
    %c0_41 = arith.constant 0 : index
    %63 = vector.load %arg7[%c0_40, %c0_41] : memref<1x128xf32, #tpu.memory_space<vmem>>, vector<1x128xf32>
    %64 = vector.broadcast %63 : vector<1x128xf32> to vector<8x128xf32>
    %65 = arith.addf %62, %64 : vector<8x128xf32>
    %66 = arith.addf %5, %65 : vector<8x128xf32>
    %67 = arith.mulf %66, %66 : vector<8x128xf32>
    %cst_42 = arith.constant dense<0.000000e+00> : vector<8xf32>
    %68 = vector.multi_reduction <add>, %67, %cst_42 [1] : vector<8x128xf32> to vector<8xf32>
    %69 = vector.shape_cast %68 : vector<8xf32> to vector<8x1xf32>
    %cst_43 = arith.constant 1.280000e+02 : f32
    %70 = vector.broadcast %cst_43 : f32 to vector<8x1xf32>
    %71 = arith.divf %69, %70 : vector<8x1xf32>
    %cst_44 = arith.constant 1.1920929E-7 : f32
    %72 = vector.broadcast %cst_44 : f32 to vector<8x1xf32>
    %73 = arith.addf %71, %72 : vector<8x1xf32>
    %74 = math.rsqrt %73 : vector<8x1xf32>
    %75 = vector.broadcast %74 : vector<8x1xf32> to vector<8x128xf32>
    %76 = arith.mulf %66, %75 : vector<8x128xf32>
    %77 = arith.truncf %76 : vector<8x128xf32> to vector<8x128xbf16>
    %c0_i32_45 = arith.constant 0 : i32
    %78 = tpu.memref_slice %arg17[%c0_i32_45] : memref<2x!tpu.dma_semaphore, #tpu.memory_space<semaphore_mem>> -> memref<1x!tpu.dma_semaphore, #tpu.memory_space<semaphore_mem>>
    %79 = tpu.memref_squeeze %78 : memref<1x!tpu.dma_semaphore, #tpu.memory_space<semaphore_mem>> -> memref<!tpu.dma_semaphore, #tpu.memory_space<semaphore_mem>>
    tpu.wait_dma2 semaphore(%79 : memref<!tpu.dma_semaphore, #tpu.memory_space<semaphore_mem>>) src(%arg10 : memref<128x1024xbf16, #tpu.memory_space<any>>) dst(%arg13 : memref<128x1024xbf16, #tpu.memory_space<vmem>>)
    %c1_i32_46 = arith.constant 1 : i32
    %80 = tpu.memref_slice %arg17[%c1_i32_46] : memref<2x!tpu.dma_semaphore, #tpu.memory_space<semaphore_mem>> -> memref<1x!tpu.dma_semaphore, #tpu.memory_space<semaphore_mem>>
    %81 = tpu.memref_squeeze %80 : memref<1x!tpu.dma_semaphore, #tpu.memory_space<semaphore_mem>> -> memref<!tpu.dma_semaphore, #tpu.memory_space<semaphore_mem>>
    tpu.wait_dma2 semaphore(%81 : memref<!tpu.dma_semaphore, #tpu.memory_space<semaphore_mem>>) src(%arg11 : memref<512x128xbf16, #tpu.memory_space<any>>) dst(%arg14 : memref<512x128xbf16, #tpu.memory_space<vmem>>)
    %c0_47 = arith.constant 0 : index
    %c0_48 = arith.constant 0 : index
    %82 = vector.load %arg13[%c0_47, %c0_48] : memref<128x1024xbf16, #tpu.memory_space<vmem>>, vector<128x1024xbf16>
    %cst_49 = arith.constant dense<0.000000e+00> : vector<8x1024xf32>
    %83 = tpu.matmul %77, %82, %cst_49 {dimension_numbers = #tpu.dot_dimension_numbers<[1], [0], [0], [1], [0, 0, 1, 1], [], []>} : vector<8x128xbf16>, vector<128x1024xbf16>, vector<8x1024xf32> -> vector<8x1024xf32>
    %c0_50 = arith.constant 0 : index
    %c0_51 = arith.constant 0 : index
    %84 = vector.load %arg8[%c0_50, %c0_51] : memref<1x1024xf32, #tpu.memory_space<vmem>>, vector<1x1024xf32>
    %85 = vector.broadcast %84 : vector<1x1024xf32> to vector<8x1024xf32>
    %86 = arith.addf %83, %85 : vector<8x1024xf32>
    %87 = vector.extract_strided_slice %86 {offsets = [0, 0], sizes = [8, 512], strides = [1, 1]} : vector<8x1024xf32> to vector<8x512xf32>
    %88 = arith.negf %87 : vector<8x512xf32>
    %89 = math.exp %88 : vector<8x512xf32>
    %cst_52 = arith.constant 1.000000e+00 : f32
    %90 = vector.broadcast %cst_52 : f32 to vector<8x512xf32>
    %91 = arith.addf %90, %89 : vector<8x512xf32>
    %92 = arith.divf %90, %91 : vector<8x512xf32>
    %93 = arith.mulf %87, %92 : vector<8x512xf32>
    %94 = vector.extract_strided_slice %86 {offsets = [0, 512], sizes = [8, 512], strides = [1, 1]} : vector<8x1024xf32> to vector<8x512xf32>
    %95 = arith.mulf %93, %94 : vector<8x512xf32>
    %96 = arith.truncf %95 : vector<8x512xf32> to vector<8x512xbf16>
    %c0_53 = arith.constant 0 : index
    %c0_54 = arith.constant 0 : index
    %97 = vector.load %arg14[%c0_53, %c0_54] : memref<512x128xbf16, #tpu.memory_space<vmem>>, vector<512x128xbf16>
    %cst_55 = arith.constant dense<0.000000e+00> : vector<8x128xf32>
    %98 = tpu.matmul %96, %97, %cst_55 {dimension_numbers = #tpu.dot_dimension_numbers<[1], [0], [0], [1], [0, 0, 1, 1], [], []>} : vector<8x512xbf16>, vector<512x128xbf16>, vector<8x128xf32> -> vector<8x128xf32>
    %c0_56 = arith.constant 0 : index
    %c0_57 = arith.constant 0 : index
    %99 = vector.load %arg9[%c0_56, %c0_57] : memref<1x128xf32, #tpu.memory_space<vmem>>, vector<1x128xf32>
    %100 = vector.broadcast %99 : vector<1x128xf32> to vector<8x128xf32>
    %101 = arith.addf %98, %100 : vector<8x128xf32>
    %102 = arith.addf %66, %101 : vector<8x128xf32>
    %c0_58 = arith.constant 0 : index
    %c0_59 = arith.constant 0 : index
    %c0_60 = arith.constant 0 : index
    %103 = vector.load %arg12[%c0_58, %c0_59, %c0_60] : memref<1x8x128xf32, #tpu.memory_space<vmem>>, vector<1x8x128xf32>
    %104 = vector.shape_cast %103 : vector<1x8x128xf32> to vector<8x128xf32>
    %105 = vector.shape_cast %102 : vector<8x128xf32> to vector<1x8x128xf32>
    tpu.vector_store %arg12[%c0_58, %c0_59, %c0_60], %105 {strides = array<i32>} : memref<1x8x128xf32, #tpu.memory_space<vmem>>, vector<1x8x128xf32>,
    return
  }
  func.func @transform_0(%arg0: i32) -> (i32, i32, i32) {
    %c0_i32 = arith.constant 0 : i32
    %c0_i32_0 = arith.constant 0 : i32
    %c0_i32_1 = arith.constant 0 : i32
    return %arg0, %c0_i32, %c0_i32_0 : i32, i32, i32
  }
  func.func @transform_1(%arg0: i32) -> (i32, i32) {
    %c0_i32 = arith.constant 0 : i32
    %c0_i32_0 = arith.constant 0 : i32
    %c0_i32_1 = arith.constant 0 : i32
    return %c0_i32, %c0_i32_0 : i32, i32
  }
  func.func @transform_2(%arg0: i32) -> (i32, i32) {
    %c0_i32 = arith.constant 0 : i32
    %c0_i32_0 = arith.constant 0 : i32
    %c0_i32_1 = arith.constant 0 : i32
    return %c0_i32, %c0_i32_0 : i32, i32
  }
  func.func @transform_3(%arg0: i32) -> (i32, i32) {
    %c0_i32 = arith.constant 0 : i32
    %c0_i32_0 = arith.constant 0 : i32
    %c0_i32_1 = arith.constant 0 : i32
    return %c0_i32, %c0_i32_0 : i32, i32
  }
  func.func @transform_4(%arg0: i32) -> (i32, i32) {
    %c0_i32 = arith.constant 0 : i32
    %c0_i32_0 = arith.constant 0 : i32
    %c0_i32_1 = arith.constant 0 : i32
    return %c0_i32, %c0_i32_0 : i32, i32
  }
  func.func @transform_5(%arg0: i32) -> (i32, i32) {
    %c0_i32 = arith.constant 0 : i32
    %c0_i32_0 = arith.constant 0 : i32
    %c0_i32_1 = arith.constant 0 : i32
    return %c0_i32, %c0_i32_0 : i32, i32
  }
  func.func @transform_6(%arg0: i32) -> (i32, i32) {
    %c0_i32 = arith.constant 0 : i32
    %c0_i32_0 = arith.constant 0 : i32
    %c0_i32_1 = arith.constant 0 : i32
    return %c0_i32, %c0_i32_0 : i32, i32
  }
  func.func @transform_7(%arg0: i32) -> (i32, i32) {
    %c0_i32 = arith.constant 0 : i32
    %c0_i32_0 = arith.constant 0 : i32
    %c0_i32_1 = arith.constant 0 : i32
    return %c0_i32, %c0_i32_0 : i32, i32
  }
  func.func @transform_8(%arg0: i32) -> (i32, i32) {
    %c0_i32 = arith.constant 0 : i32
    %c0_i32_0 = arith.constant 0 : i32
    %c0_i32_1 = arith.constant 0 : i32
    return %c0_i32, %c0_i32_0 : i32, i32
  }
  func.func @transform_11(%arg0: i32) -> (i32, i32, i32) {
    %c0_i32 = arith.constant 0 : i32
    %c0_i32_0 = arith.constant 0 : i32
    %c0_i32_1 = arith.constant 0 : i32
    return %arg0, %c0_i32, %c0_i32_0 : i32, i32, i32
  }
}

</mosaic_0001>

<bundles_post_ra>
// kernel: tpu_custom_call.1
= control target key start
LH: loop header
LB: loop body
LE: loop exit
PB: predicated region body
PF: predicated region fallthrough
CT: control target
= control target key end

     0   :  { %s2809_s0 = inlined_call_operand.hbm [shape: f32[2,8,128], index: 0, kind: input, shape index: {}]   ;;  %s2810_s1 = inlined_call_operand.hbm [shape: f32[8,32], index: 1, kind: input, shape index: {}]   ;;  %s2811_s2 = inlined_call_operand.hbm [shape: f32[32,128], index: 2, kind: input, shape index: {}]   ;;  %s2812_s3 = inlined_call_operand.hbm [shape: bf16[128,384], index: 3, kind: input, shape index: {}]   ;;  %s2813_s4 = inlined_call_operand.vmem [shape: f32[1,384], index: 4, kind: input, shape index: {}]   ;;  %s2814_s5 = inlined_call_operand.hbm [shape: bf16[128,128], index: 5, kind: input, shape index: {}]   ;;  %s2815_s6 = inlined_call_operand.vmem [shape: f32[1,128], index: 6, kind: input, shape index: {}]   ;;  %s2816_s7 = inlined_call_operand.vmem [shape: f32[1,1024], index: 7, kind: input, shape index: {}]   ;;  %s2817_s8 = inlined_call_operand.vmem [shape: f32[1,128], index: 8, kind: input, shape index: {}]   ;;  %s2818_s9 = inlined_call_operand.hbm [shape: bf16[128,1024], index: 9, kind: input, shape index: {}]   ;;  %s2819_s10 = inlined_call_operand.hbm [shape: bf16[512,128], index: 10, kind: input, shape index: {}]   ;;  %s2820_s11 = inlined_call_operand.hbm [shape: f32[2,8,128], index: 11, kind: output, shape index: {}]  }
   0x1   :  { %2826 = sst [smem:[#allocation29_spill]] %s2809_s0 }
   0x2   :  { %2827 = sst [smem:[#allocation30_spill]] %s2810_s1 }
   0x3   :  { %2828 = sst [smem:[#allocation31_spill]] %s2811_s2 }
   0x4   :  { %2829 = sst [smem:[#allocation32_spill]] %s2812_s3 }
   0x5   :  { %2830 = sst [smem:[#allocation33_spill]] %s2814_s5 }
   0x6   :  { %2831 = sst [smem:[#allocation34_spill]] %s2820_s11 }
   0x7   :  { %16 = vsyncpa [#allocation8], 0 }
   0x8   :  { %18 = vsyncpa [#allocation8 + $0x1], 0 }
   0x9   :  { %19 = vsyncpa [#allocation11], 0 }
   0xa   :  { %20 = vsyncpa [#allocation14], 0 }
   0xb   :  { %21 = vsyncpa [#allocation9], 0 }
   0xc   :  { %23 = vsyncpa [#allocation9 + $0x1], 0  ;;  %s2402_s17 = smov 0   ;;  %s2404_s18 = smov 0  }
   0xd   :  { %s2406_s19 = smov 0   ;;  %s2408_s20 = smov 0  }
   0xe LB: > { %s2315_s21 = smov [#allocation10]   ;;  %s2423_s23 = sadd.s32 4294967295, %s2313_s20   ;;  %s2313_s20 = sphi %s2408_s20, %s2859_s20   ;;  %s2309_s19 = sphi %s2406_s19, %s2858_s19   ;;  %s2305_s18 = sphi %s2404_s18, %s2857_s18   ;;  %s2301_s17 = sphi %s2402_s17, %s2856_s17  }
   0xf   : > { %s267_s22 = sshll.u32 %s2315_s21, 4  ;;  %p1668_p0 = scmp.ge.s32.totalorder %s2313_s20, 1  ;;  %s268_s22 = int_to_ptr.vmem [resolvable:$true] %s267_s22 }
  0x10   : > { %p2821_p1 = scmp.eq.s32.totalorder %s2423_s23, 0  ;;  %p254_p2 = scmp.lt.s32.totalorder %s2313_s20, 3 }
  0x11   : > { %s2316_s25 = smov [#allocation13]   ;;  %s2317_s28 = smov [#allocation12]  }
  0x12   : > { %p2428_p3 = pnand %p1668_p0, %p254_p2  ;;  %s290_s26 = sshll.u32 %s2316_s25, 4  ;;  %s2435_s26 = int_to_ptr.vmem [resolvable:$true] %s290_s26 }
  0x13   : > { %s277_s29 = sshll.u32 %s2317_s28, 4  ;;  %s2834_s1 = sld [smem:[#allocation30_spill]]  ;;  %s2443_s29 = int_to_ptr.vmem [resolvable:$true] %s277_s29 }
  0x14   : > { %s2832_s24 = scalar_select %p2428_p3, 1, 0 }
  0x15   : > { %p1919_p5 = pneg %p2428_p3 }
  0x17   : > { %p2439_p6 = pnand %p1919_p5, %p2821_p1 }
  0x19   : > { %s2071_s13 = scalar_lea.hbm %s2834_s1, 128  ;;  %p2453_p8 = pneg %p2439_p6 }
  0x1a   : > { %p2072_p7 = scmp.ne.s32.totalorder %s2834_s1, %s2071_s13  ;;  %p2078_p11 = scmp.lt.u32.totalorder %s2071_s13, %s2834_s1 }
  0x1c   : > { %p2074_p9 = pnand %p2453_p8, %p2072_p7 }
  0x1e   : > { %p2075_p10 = pneg %p2074_p9 }
  0x20   : > { %p2080_p12 = pnand %p2078_p11, %p2075_p10 }
  0x22   : > { %2083 = shalt.err (!%p2080_p12)
}
  0x23   : > { %s2084_s28 = scalar_lea.vmem %s268_s22, 128  ;;  %p2092_p5 = scmp.lt.s32.totalorder %s268_s22, %s268_s22 }
  0x24   : > { %p2085_p13 = scmp.ne.s32.totalorder %s268_s22, %s2084_s28  ;;  %p2093_p4 = scmp.lt.s32.totalorder %s2084_s28, %s2084_s28 }
  0x26   : > { %p2087_p0 = pnand %p2085_p13, %p2453_p8  ;;  %p2094_p1 = por %p2093_p4, %p2092_p5 }
  0x28   : > { %p2088_p2 = pneg %p2087_p0 }
  0x2a   : > { %p2095_p3 = pnand %p2094_p1, %p2088_p2 }
  0x2c   : > { %2098 = shalt.err (!%p2095_p3)
}
  0x2d   : > { %1922 = dma.hbm_to_vmem [thread:$0]  (!%p2439_p6), %s2834_s1, 128, %s268_s22, [#allocation11]  }
  0x2e   : > { %s2836_s3 = sld [smem:[#allocation32_spill]] }
  0x34   : > { %s2099_s15 = scalar_lea.hbm %s2836_s3, 3072 }
  0x35   : > { %p2100_p7 = scmp.ne.s32.totalorder %s2836_s3, %s2099_s15  ;;  %p2106_p1 = scmp.lt.u32.totalorder %s2099_s15, %s2836_s3 }
  0x37   : > { %p2102_p9 = pnand %p2100_p7, %p2453_p8 }
  0x39   : > { %p2103_p4 = pneg %p2102_p9 }
  0x3b   : > { %p2108_p3 = pnand %p2106_p1, %p2103_p4 }
  0x3d   : > { %2111 = shalt.err (!%p2108_p3)
}
  0x3e   : > { %s2112_s22 = scalar_lea.vmem %s2435_s26, 3072  ;;  %p2120_p13 = scmp.lt.s32.totalorder %s2435_s26, %s2435_s26 }
  0x3f   : > { %p2113_p10 = scmp.ne.s32.totalorder %s2435_s26, %s2112_s22  ;;  %p2121_p0 = scmp.lt.s32.totalorder %s2112_s22, %s2112_s22 }
  0x41   : > { %p2115_p11 = pnand %p2113_p10, %p2453_p8  ;;  %p2122_p2 = por %p2121_p0, %p2120_p13 }
  0x43   : > { %p2116_p12 = pneg %p2115_p11 }
  0x45   : > { %p2123_p5 = pnand %p2122_p2, %p2116_p12 }
  0x47   : > { %2126 = shalt.err (!%p2123_p5)
}
  0x48   : > { %s2318_s30 = smov 192   ;;  %s2319_s11 = smov 12  }
  0x49   : > { %1928 = dma.hbm_to_vmem [thread:$0]  (!%p2439_p6), %s2836_s3, 3072, %s2435_s26, [#allocation14], %s2318_s30, %s2318_s30, %s2319_s11  }
  0x4a   : > { %s2837_s2 = sld [smem:[#allocation31_spill]] }
  0x50   : > { %s2127_s21 = scalar_lea.hbm %s2837_s2, 512 }
  0x51   : > { %p2128_p7 = scmp.ne.s32.totalorder %s2837_s2, %s2127_s21  ;;  %p2134_p1 = scmp.lt.u32.totalorder %s2127_s21, %s2837_s2 }
  0x53   : > { %p2130_p9 = pnand %p2128_p7, %p2453_p8 }
  0x55   : > { %p2131_p4 = pneg %p2130_p9 }
  0x57   : > { %p2136_p3 = pnand %p2134_p1, %p2131_p4 }
  0x59   : > { %2139 = shalt.err (!%p2136_p3)
}
  0x5a   : > { %s2140_s26 = scalar_lea.vmem %s2443_s29, 512  ;;  %p2148_p13 = scmp.lt.s32.totalorder %s2443_s29, %s2443_s29 }
  0x5b   : > { %p2141_p10 = scmp.ne.s32.totalorder %s2443_s29, %s2140_s26  ;;  %p2149_p0 = scmp.lt.s32.totalorder %s2140_s26, %s2140_s26 }
  0x5d   : > { %p2143_p11 = pnand %p2141_p10, %p2453_p8  ;;  %p2150_p2 = por %p2149_p0, %p2148_p13 }
  0x5f   : > { %p2144_p12 = pneg %p2143_p11 }
  0x61   : > { %p2151_p5 = pnand %p2150_p2, %p2144_p12 }
  0x63   : > { %2154 = shalt.err (!%p2151_p5)
}
  0x64   : > { %s2320_s30 = smov 128   ;;  %s2321_s1 = smov 8  }
  0x65   : > { %1925 = dma.hbm_to_vmem [thread:$0]  (!%p2439_p6), %s2837_s2, 512, %s2443_s29, [#allocation11], %s2320_s30, %s2320_s30, %s2321_s1  }
  0x66   : > { %s2322_s13 = smov [#allocation15]   ;;  %s2838_s5 = sld [smem:[#allocation33_spill]] }
  0x67   : > { %s306_s14 = sshll.u32 %s2322_s13, 4  ;;  %s307_s14 = int_to_ptr.vmem [resolvable:$true] %s306_s14 }
  0x6c   : > { %s2155_s25 = scalar_lea.hbm %s2838_s5, 1024 }
  0x6d   : > { %p2156_p7 = scmp.ne.s32.totalorder %s2838_s5, %s2155_s25  ;;  %p2162_p1 = scmp.lt.u32.totalorder %s2155_s25, %s2838_s5 }
  0x6f   : > { %p2158_p9 = pnand %p2156_p7, %p2453_p8 }
  0x71   : > { %p2159_p4 = pneg %p2158_p9 }
  0x73   : > { %p2164_p3 = pnand %p2162_p1, %p2159_p4 }
  0x75   : > { %2167 = shalt.err (!%p2164_p3)
}
  0x76   : > { %s2168_s29 = scalar_lea.vmem %s307_s14, 1024  ;;  %p2176_p13 = scmp.lt.s32.totalorder %s307_s14, %s307_s14 }
  0x77   : > { %p2169_p10 = scmp.ne.s32.totalorder %s307_s14, %s2168_s29  ;;  %p2177_p0 = scmp.lt.s32.totalorder %s2168_s29, %s2168_s29 }
  0x79   : > { %p2171_p11 = pnand %p2169_p10, %p2453_p8  ;;  %p2178_p2 = por %p2177_p0, %p2176_p13 }
  0x7b   : > { %p2172_p12 = pneg %p2171_p11 }
  0x7d   : > { %p2179_p5 = pnand %p2178_p2, %p2172_p12 }
  0x7f   : > { %2182 = shalt.err (!%p2179_p5)
}
  0x80   : > { %s2323_s30 = smov 64   ;;  %s2324_s3 = smov 4  }
  0x81   : > { %1931 = dma.hbm_to_vmem [thread:$0]  (!%p2439_p6), %s2838_s5, 1024, %s307_s14, [#allocation14], %s2323_s30, %s2323_s30, %s2324_s3  }
  0x82   : > { %s1667_s11 = sadd.s32 4294967294, %s2313_s20   ;;  %s2535_s12 = sadd.s32 1, %s2313_s20  }
  0x83   : > { %s33_s13 = ssub.s32 %s2313_s20, %s2535_s12  ;;  %s36_s15 = sadd.s32 1, %s2309_s19 }
  0x84   : > { %p34_p8 = scmp.eq.s32.totalorder %s33_s13, 0  ;;  %p43_p7 = scmp.ne.s32.totalorder %s2309_s19, %s2305_s18 }
  0x85   : > { %p44_p9 = scmp.eq.s32.totalorder %s2313_s20, 0  ;;  %p49_p4 = scmp.ne.s32.totalorder %s2305_s18, %s2301_s17 }
  0x86   : > { %s2546_s21 = scalar_select %p34_p8, %s2309_s19, %s36_s15  }
  0x87   : > { %p2548_p1 = por %p44_p9, %p43_p7  ;;  %p2840_p3 = scmp.eq.s32.totalorder %s2423_s23, 0 }
  0x88   : > { %p241_p10 = scmp.eq.s32.totalorder %s2423_s23, 1  ;;  %p247_p11 = scmp.eq.s32.totalorder %s1667_s11, 1 }
  0x89   : > { %p2554_p6 = por %p2840_p3, %p49_p4  ;;  %p1944_p12 = scmp.lt.s32.totalorder %s2313_s20, 2 }
  0x8a   : > { %s329_s25 = sand.u32 1, %s2309_s19   ;;  %p2561_p13 = por %p241_p10, %p43_p7 }
  0x8b   : > { %p2565_p0 = por %p247_p11, %p49_p4  ;;  %s1674_s26 = sshll.u32 %s329_s25, 3 }
  0x8c   : > { %s2842_s28 = scalar_select %p2561_p13, 1, 0 }
  0x8d   : > { %s2843_s22 = scalar_select %p2565_p0, 1, 0 }
  0x8e   : > { %s1675_s29 = sshll.u32 %s2313_s20, 7  ;;  %s2844_s0 = sld [smem:[#allocation29_spill]] }
  0x8f   : > { %s333_s1 = scalar_lea.vmem [#allocation7], %s1674_s26  ;;  %p2579_p2 = pnand %p1944_p12, %p2548_p1 }
  0x90   : > { %s340_s11 = sshll.u32 %s333_s1, 4  ;;  %s330_s15 = scalar_lea.sflag [#allocation8], %s329_s25  ;;  %s2575_s11 = int_to_ptr.vmem [resolvable:$true] %s340_s11 }
  0x91   : > { %p2185_p8 = pneg %p2579_p2 }
  0x94   : > { %s2573_s16 = scalar_lea.hbm %s2844_s0, %s1675_s29  ;;  %s2188_s30 = scalar_lea.hbm %s2844_s0, 256 }
  0x95   : > { %s2183_s2 = scalar_lea.hbm %s2573_s16, 128  ;;  %p2189_p4 = scmp.lt.u32.totalorder %s2573_s16, %s2844_s0 }
  0x96   : > { %p2184_p5 = scmp.ne.s32.totalorder %s2573_s16, %s2183_s2  ;;  %p2190_p1 = scmp.lt.u32.totalorder %s2188_s30, %s2183_s2 }
  0x97   : > { %p2192_p10 = scmp.lt.u32.totalorder %s2183_s2, %s2573_s16 }
  0x98   : > { %p2186_p7 = pnand %p2185_p8, %p2184_p5  ;;  %p2191_p3 = por %p2190_p1, %p2189_p4 }
  0x9a   : > { %p2187_p9 = pneg %p2186_p7  ;;  %p2193_p11 = por %p2192_p10, %p2191_p3 }
  0x9c   : > { %p2194_p12 = pnand %p2193_p11, %p2187_p9 }
  0x9e   : > { %2197 = shalt.err (!%p2194_p12)
}
  0x9f   : > { %s2198_s25 = scalar_lea.vmem %s2575_s11, 128  ;;  %s2325_s1 = smov [#allocation7]  }
  0xa0   : > { %p2199_p5 = scmp.ne.s32.totalorder %s2575_s11, %s2198_s25  ;;  %s2203_s26 = sshll.u32 %s2325_s1, 4  ;;  %s2204_s26 = int_to_ptr.vmem [resolvable:$false] %s2203_s26 }
  0xa1   : > { %s2205_s29 = scalar_lea.vmem %s2204_s26, 256  ;;  %p2206_p13 = scmp.lt.s32.totalorder %s2575_s11, %s2204_s26 }
  0xa2   : > { %p2201_p7 = pnand %p2199_p5, %p2185_p8  ;;  %p2207_p4 = scmp.lt.s32.totalorder %s2205_s29, %s2198_s25 }
  0xa4   : > { %p2202_p0 = pneg %p2201_p7  ;;  %p2208_p1 = por %p2207_p4, %p2206_p13 }
  0xa6   : > { %p2209_p3 = pnand %p2208_p1, %p2202_p0 }
  0xa8   : > { %2212 = shalt.err (!%p2209_p3)
}
  0xa9   : > { %1935 = dma.hbm_to_vmem [thread:$0]  (!%p2579_p2), %s2573_s16, 128, %s2575_s11, %s330_s15  }
  0xaa   : > { %p2846_p9 = scmp.ne.s32.totalorder %s2832_s24, 0 }
  0xac   : > { %349 = sbr.rel (%p2846_p9) target bundleno = 2118 (0x846), region = 56 }
  0xb3   : > { %s2611_s2 = sand.u32 1, %s2305_s18  }
  0xb4   : > { %s2825_s30 = sshll.u32 %s2611_s2, 3  ;;  %s352_s27 = scalar_lea.sflag [#allocation8], %s2611_s2 }
  0xb5   : > { %s2617_s3 = scalar_lea.vmem [#allocation7], %s2825_s30 }
  0xb6   : > { %2280 = dma.done.wait (%p2554_p6), %s352_s27, 128  }
  0xb7   : > { %2282 = vsyncadd (%p2554_p6), %s352_s27, 4294967168  ;;  %p2847_p13 = scmp.eq.s32.totalorder %s2423_s23, 0 }
  0xb9   : > { %2284 = dma.done.wait (%p2847_p13), [#allocation11], 640   ;;  %p2848_p0 = pmov %p2847_p13 }
  0xbb   : > { %2286 = vsyncadd (%p2848_p0), [#allocation11], 4294966656  ;;  %p2849_p2 = pmov %p2848_p0 }
  0xbc   : > { %p2850_p8 = pmov %p2848_p0 }
  0xbd   : > { %2288 = dma.done.wait (%p2849_p2), [#allocation14], 4096  }
  0xbe   : > { %2290 = vsyncadd (%p2850_p8), [#allocation14], 4294963200  ;;  %s411_s24 = sld [smem:[#allocation0]]   ;;  %s2326_s16 = smov 1024   ;;  %v2327_v0 = vmov 0.0   ;;  %v2337_v25 = vmov 0   ;;  %v498_v35 = vlaneseq }
  0xbf   : > { %423 = sst [smem:[#allocation18]] %s2326_s16  ;;  %1808 = vmatprep.subr.bf16.mxu1 %v2327_v0  ;;  %s2328_s14 = smov 8   ;;  %673 = vmatprep.mubr.bf16.mxu0 %v2337_v25  ;;  %vm2338_vm0 = vmmov 0   ;;  %v2339_v34 = vmov 0.0|0.0   ;;  %vm730_vm1 = vcmask 261120   ;;  %vm733_vm2 = vcmask 523520  }
  0xc0   : > { %425 = sst [smem:[#allocation18 + $0x1]] %s2326_s16  ;;  %s2329_s11 = smov 64   ;;  %1824 = vmatprep.mubr.msk.bf16.mxu1 %vm2338_vm0, %v2327_v0  ;;  %v2665_v36 = vshrl.u32 %v498_v35, 7  ;;  %vm736_vm3 = vcmask 785920   ;;  %vm739_vm4 = vcmask 1048320  }
  0xc1   : > { %427 = sst [smem:[#allocation18 + $0x2]] %s2328_s14  ;;  %s2330_s13 = smov 128  }
  0xc2   : > { %429 = sst [smem:[#allocation18 + $0x3]] %s2329_s11  ;;  %s2331_s15 = smov 2   ;;  %v508_v37 = vsub.s32 2, %v2665_v36  ;;  %v504_v39 = vsub.s32 1, %v2665_v36  ;;  %v500_v57 = vsub.s32 0, %v2665_v36 }
  0xc3   : > { %431 = sst [smem:[#allocation18 + $0x4]] %s2330_s13  ;;  %s2332_s1 = smov 512  }
  0xc4   : > { %433 = sst [smem:[#allocation18 + $0x5]] %s2331_s15  ;;  %s1683_s25 = sshll.u32 %s411_s24, 26 }
  0xc5   : > { %435 = sst [smem:[#allocation18 + $0x6]] %s2332_s1  ;;  %s1684_s26 = sadd.s32 134217728, %s1683_s25 }
  0xc6   : > { %437 = sst [smem:[#allocation18 + $0x7]] %s2329_s11  ;;  %s2333_s29 = smov 4  }
  0xc7   : > { %439 = sst [smem:[#allocation18 + $0x8]] %s2333_s29  ;;  %s2334_s27 = smov [#allocation2]  }
  0xc8   : > { %s419_s30 = sshll.u32 %s2334_s27, 4  ;;  %s2335_s16 = smov [#allocation6]   ;;  %s420_s30 = int_to_ptr.vmem [resolvable:$true] %s419_s30 }
  0xc9   : > { %s2336_s0 = smov [#allocation17]   ;;  %s2340_s24 = smov [#allocation3]  }
  0xca   : > { %441 = dma.general %s2818_s9, 8192, %s420_s30, %s2335_s16, %s2336_s0, [#allocation18], %s1684_s26, 0  }
  0xcb   : > { %722 = vst [vmem:[#allocation4] sm:$0xff] %v2327_v0  ;;  %723 = vst [vmem:[#allocation4 + $0x8] sm:$0xff] %v2327_v0  ;;  %v2644_v1 = vld [vmem:[%s2617_s3] sm:$0xff]  ;;  %v2013_v7 = vld [vmem:[#allocation13 + $0x18] ss:$12 sps:$4 sm:$0xff]   ;;  %s450_s11 = sshll.u32 %s2340_s24, 4  ;;  %s451_s11 = int_to_ptr.vmem [resolvable:$true] %s450_s11 }
  0xcc   : > { %724 = vst [vmem:[#allocation4 + $0x10] sm:$0xff] %v2327_v0  ;;  %725 = vst [vmem:[#allocation4 + $0x18] sm:$0xff] %v2327_v0  ;;  %v455_v2 = vmul.f32 %v2644_v1, %v2644_v1  ;;  %v2007_v3 = vld [vmem:[#allocation13 + $0x4] ss:$12 sps:$4 sm:$0xff]   ;;  %v2009_v4 = vld [vmem:[#allocation13] ss:$12 sps:$4 sm:$0xff]  }
  0xcd   : > { %726 = vst [vmem:[#allocation5] sm:$0xff] %v2327_v0  ;;  %727 = vst [vmem:[#allocation5 + $0x8] sm:$0xff] %v2327_v0  ;;  %v2010_v5 = vld [vmem:[#allocation13 + $0x8] ss:$12 sps:$4 sm:$0xff]   ;;  %641 = vmatprep.subr.bf16.mxu0 %v2007_v3  ;;  %v2014_v8 = vld [vmem:[#allocation13 + $0x20] ss:$12 sps:$4 sm:$0xff]  }
  0xce   : > { %728 = vst [vmem:[#allocation5 + $0x10] sm:$0xff] %v2327_v0  ;;  %729 = vst [vmem:[#allocation5 + $0x18] sm:$0xff] %v2327_v0  ;;  %456 = vadd.xlane.f32.xlu0 %v455_v2  ;;  %v2011_v6 = vld [vmem:[#allocation13 + $0x1c] ss:$12 sps:$4 sm:$0xff]   ;;  %642 = vmatpush1.bf16.msra.mxu0 %v2009_v4  ;;  %v2015_v9 = vld [vmem:[#allocation13 + $0x34] ss:$12 sps:$4 sm:$0xff]  }
  0xcf   : > { %1809 = vmatpush3.bf16.msra.mxu1 %v2010_v5  ;;  %643 = vmatprep.subr.bf16.mxu0 %v2011_v6  ;;  %v2017_v10 = vld [vmem:[#allocation13 + $0x30] ss:$12 sps:$4 sm:$0xff]   ;;  %v2018_v11 = vld [vmem:[#allocation13 + $0x38] ss:$12 sps:$4 sm:$0xff]   ;;  %v2021_v13 = vld [vmem:[#allocation13 + $0x48] ss:$12 sps:$4 sm:$0xff]  }
  0xd0   : > { %1810 = vmatprep.subr.bf16.mxu1 %v2327_v0  ;;  %v2019_v12 = vld [vmem:[#allocation13 + $0x4c] ss:$12 sps:$4 sm:$0xff]   ;;  %v2022_v14 = vld [vmem:[#allocation13 + $0x50] ss:$12 sps:$4 sm:$0xff]   ;;  %v2026_v17 = vld [vmem:[#allocation13 + $0x68] ss:$12 sps:$4 sm:$0xff]  }
  0xd1   : > { %v2023_v15 = vld [vmem:[#allocation13 + $0x64] ss:$12 sps:$4 sm:$0xff]   ;;  %v2025_v16 = vld [vmem:[#allocation13 + $0x60] ss:$12 sps:$4 sm:$0xff]   ;;  %v2027_v18 = vld [vmem:[#allocation13 + $0x7c] ss:$12 sps:$4 sm:$0xff]  }
  0xd2   : > { %644 = vmatpush1.bf16.msra.mxu0 %v2013_v7  ;;  %v2029_v19 = vld [vmem:[#allocation13 + $0x78] ss:$12 sps:$4 sm:$0xff]   ;;  %v2030_v20 = vld [vmem:[#allocation13 + $0x80] ss:$12 sps:$4 sm:$0xff]   ;;  %v2033_v22 = vld [vmem:[#allocation13 + $0x90] ss:$12 sps:$4 sm:$0xff]  }
  0xd3   : > { %1811 = vmatpush3.bf16.msra.mxu1 %v2014_v8  ;;  %645 = vmatprep.subr.bf16.mxu0 %v2015_v9  ;;  %v2031_v21 = vld [vmem:[#allocation13 + $0x94] ss:$12 sps:$4 sm:$0xff]   ;;  %v2034_v23 = vld [vmem:[#allocation13 + $0x98] ss:$12 sps:$4 sm:$0xff]   ;;  %v2038_v27 = vld [vmem:[#allocation13 + $0xb0] ss:$12 sps:$4 sm:$0xff]  }
  0xd4   : > { %1812 = vmatprep.subr.bf16.mxu1 %v2327_v0  ;;  %v2035_v24 = vld [vmem:[#allocation13 + $0xac] ss:$12 sps:$4 sm:$0xff]   ;;  %v2037_v26 = vld [vmem:[#allocation13 + $0xa8] ss:$12 sps:$4 sm:$0xff]   ;;  %s2213_s25 = scalar_lea.hbm %s2819_s10, 4096 }
  0xd5   : > { %v496_v38 = vld [vmem:[%s2813_s4] sm:$0x7]  ;;  %v746_v5 = vld [vmem:[#allocation10] sm:$0xff]  ;;  %p2214_p6 = scmp.ne.s32.totalorder %s2819_s10, %s2213_s25  ;;  %p2217_p10 = scmp.lt.u32.totalorder %s2213_s25, %s2819_s10 }
  0xd6   : > { %646 = vmatpush1.bf16.msra.mxu0 %v2017_v10  ;;  %v509_v40 = vrot.slane %v496_v38, %v508_v37  ;;  %v505_v41 = vrot.slane %v496_v38, %v504_v39  ;;  %v501_v59 = vrot.slane %v496_v38, %v500_v57  ;;  %v2039_v10 = vld [vmem:[#allocation15] sm:$0xff]   ;;  %v1711_v38 = vld [vmem:[%s2815_s6] ss:$0 sm:$0xff] }
  0xd7   : > { %1813 = vmatpush3.bf16.msra.mxu1 %v2018_v11  ;;  %647 = vmatprep.subr.bf16.mxu0 %v2019_v12  ;;  %v2040_v11 = vld [vmem:[#allocation15 + $0x8] sm:$0xff]   ;;  %p2219_p11 = pnand %p2217_p10, %p2214_p6 }
  0xd8   : > { %1814 = vmatprep.subr.bf16.mxu1 %v2327_v0 }
  0xda   : > { %648 = vmatpush1.bf16.msra.mxu0 %v2021_v13 }
  0xdb   : > { %1815 = vmatpush3.bf16.msra.mxu1 %v2022_v14  ;;  %649 = vmatprep.subr.bf16.mxu0 %v2023_v15  ;;  %v900_v15 = vld [vmem:[#allocation12] sm:$0xff] }
  0xdc   : > { %1816 = vmatprep.subr.bf16.mxu1 %v2327_v0 }
  0xde   : > { %650 = vmatpush1.bf16.msra.mxu0 %v2025_v16  ;;  %v901_v16 = vld [vmem:[#allocation12 + $0x8] sm:$0xff] }
  0xdf   : > { %1817 = vmatpush3.bf16.msra.mxu1 %v2026_v17  ;;  %651 = vmatprep.subr.bf16.mxu0 %v2027_v18  ;;  %v1894_v17 = vpack.c.bf16 %v901_v16, %v900_v15  ;;  %v902_v18 = vld [vmem:[#allocation12 + $0x10] sm:$0xff] }
  0xe0   : > { %1818 = vmatprep.subr.bf16.mxu1 %v2327_v0 }
  0xe2   : > { %652 = vmatpush1.bf16.msra.mxu0 %v2029_v19  ;;  %v903_v19 = vld [vmem:[#allocation12 + $0x18] sm:$0xff] }
  0xe3   : > { %1819 = vmatpush3.bf16.msra.mxu1 %v2030_v20  ;;  %653 = vmatprep.subr.bf16.mxu0 %v2031_v21  ;;  %v1897_v21 = vpack.c.bf16 %v903_v19, %v902_v18 }
  0xe4   : > { %1820 = vmatprep.subr.bf16.mxu1 %v2327_v0 }
  0xe6   : > { %654 = vmatpush1.bf16.msra.mxu0 %v2033_v22  ;;  %v2041_v22 = vld [vmem:[#allocation15 + $0x10] sm:$0xff]  }
  0xe7   : > { %1821 = vmatpush3.bf16.msra.mxu1 %v2034_v23  ;;  %655 = vmatprep.subr.bf16.mxu0 %v2035_v24  ;;  %v2042_v23 = vld [vmem:[#allocation15 + $0x18] sm:$0xff]   ;;  %v2043_v24 = vld [vmem:[#allocation15 + $0x20] sm:$0xff]  }
  0xe8   : > { %1822 = vmatprep.subr.bf16.mxu1 %v2327_v0 }
  0xea   : > { %656 = vmatpush1.bf16.msra.mxu0 %v2037_v26  ;;  %v2044_v26 = vld [vmem:[#allocation15 + $0x28] sm:$0xff]  }
  0xeb   : > { %1823 = vmatpush3.bf16.msra.mxu1 %v2038_v27  ;;  %1861 = vmatprep.subr.bf16.mxu0 %v2327_v0  ;;  %v2045_v27 = vld [vmem:[#allocation15 + $0x30] sm:$0xff]  }
  0xec   : > { %1881 = vmatprep.subr.bf16.mxu1 %v2339_v34 }
 0x15b   : > { %v457_v28 = vpop.xlane.xlu0 %456 }
 0x15c   : > { %v459_v29 = vmul.f32 0.0078125, %v457_v28  ;;  %v2046_v28 = vld [vmem:[#allocation15 + $0x38] sm:$0xff]  }
 0x15e   : > { %v460_v30 = vadd.f32 1.1920929e-07, %v459_v29 }
 0x160   : > { %2047 = vrsqrt.f32 %v460_v30 }
 0x16a   : > { %v2048_v31 = vpop.eup %2047 }
 0x16b   : > { %v462_v32 = vmul.f32 %v2048_v31, %v2644_v1 }
 0x16d   : > { %v463_v33 = vpack.c.bf16 %v462_v32, %v462_v32 }
 0x16f   : > { %674 = vmatmul.mubr.bf16.vlgmr.msra.gmra.mrb[0].mxu0 %v463_v33  ;;  %1825 = vmatmul.mubr.bf16.vlgmr.msra.gmra.mrb[0].mxu1 %v463_v33 }
 0x170   : > { %1836 = vmatprep.mubr.msk.f32.mxu1 %vm2338_vm0, %v2327_v0  ;;  %1877 = vmatprep.mubr.msk.bf16.mxu0 %vm2338_vm0, %v2327_v0 }
 0x171   : > { %1862 = vmatpush3.bf16.msra.mxu0 %v2039_v10 }
 0x172   : > { %1863 = vmatprep.subr.bf16.mxu0 %v2327_v0 }
 0x175   : > { %1864 = vmatpush3.bf16.msra.mxu0 %v2040_v11 }
 0x176   : > { %1865 = vmatprep.subr.bf16.mxu0 %v2327_v0 }
 0x179   : > { %1866 = vmatpush3.bf16.msra.mxu0 %v2041_v22 }
 0x17a   : > { %1867 = vmatprep.subr.bf16.mxu0 %v2327_v0 }
 0x17d   : > { %1868 = vmatpush3.bf16.msra.mxu0 %v2042_v23 }
 0x17e   : > { %1869 = vmatprep.subr.bf16.mxu0 %v2327_v0 }
 0x181   : > { %1870 = vmatpush3.bf16.msra.mxu0 %v2043_v24 }
 0x182   : > { %1871 = vmatprep.subr.bf16.mxu0 %v2327_v0 }
 0x185   : > { %1872 = vmatpush3.bf16.msra.mxu0 %v2044_v26 }
 0x186   : > { %1873 = vmatprep.subr.bf16.mxu0 %v2327_v0 }
 0x189   : > { %1874 = vmatpush3.bf16.msra.mxu0 %v2045_v27 }
 0x18a   : > { %1875 = vmatprep.subr.bf16.mxu0 %v2327_v0 }
 0x18d   : > { %1876 = vmatpush3.bf16.msra.mxu0 %v2046_v28 }
 0x242   : > { %v675_v42 = vpop.f32.mrb[0].mxu0  ;;  %v716_v43 = vpop.f32.mrb[0].mxu1 }
 0x243   : > { %v717_v44 = vadd.f32 %v716_v43, %v509_v40  ;;  %v677_v45 = vpop.f32.mrb[1].mxu0  ;;  %v1826_v46 = vpop.f32.mrb[1].mxu1  ;;  %v676_v62 = vadd.f32 %v675_v42, %v501_v59 }
 0x244   : > { %v678_v47 = vadd.f32 %v677_v45, %v505_v41  ;;  %v679_v48 = vpop.f32.mrb[2].mxu0  ;;  %v719_v49 = vpop.f32.mrb[2].mxu1 }
 0x245   : > { %732 = vst.msk [vmem:[#allocation5] sm:$0xff] %vm730_vm1, %v717_v44  ;;  %v680_v50 = vpop.f32.mrb[3].mxu0  ;;  %v1827_v51 = vpop.f32.mrb[3].mxu1 }
 0x246   : > { %735 = vst.msk [vmem:[#allocation5 + $0x8] sm:$0xff] %vm733_vm2, %v717_v44  ;;  %734 = vst.msk [vmem:[#allocation4 + $0x8] sm:$0xff] %vm733_vm2, %v678_v47 }
 0x247   : > { %738 = vst.msk [vmem:[#allocation5 + $0x10] sm:$0xff] %vm736_vm3, %v717_v44  ;;  %737 = vst.msk [vmem:[#allocation4 + $0x10] sm:$0xff] %vm736_vm3, %v678_v47 }
 0x248   : > { %741 = vst.msk [vmem:[#allocation5 + $0x18] sm:$0xff] %vm739_vm4, %v717_v44  ;;  %740 = vst.msk [vmem:[#allocation4 + $0x18] sm:$0xff] %vm739_vm4, %v678_v47 }
 0x249   : > { %731 = vst.msk [vmem:[#allocation4] sm:$0xff] %vm730_vm1, %v678_v47 }
 0x24c   : > { %v823_v60 = vld [vmem:[#allocation5] sm:$0xff] }
 0x24d   : > { %v743_v53 = vld [vmem:[#allocation4 + $0x8] sm:$0xff] }
 0x24e   : > { %v744_v55 = vld [vmem:[#allocation4 + $0x10] sm:$0xff]  ;;  %v824_v61 = vld [vmem:[#allocation5 + $0x8] sm:$0xff] }
 0x24f   : > { %v745_v56 = vld [vmem:[#allocation4 + $0x18] sm:$0xff]  ;;  %v1888_v63 = vpack.c.bf16 %v824_v61, %v823_v60  ;;  %v825_v2 = vld [vmem:[#allocation5 + $0x10] sm:$0xff] }
 0x250   : > { %v742_v52 = vld [vmem:[#allocation4] sm:$0xff]  ;;  %v1885_v58 = vpack.c.bf16 %v745_v56, %v744_v55  ;;  %v826_v3 = vld [vmem:[#allocation5 + $0x18] sm:$0xff] }
 0x251   : > { %v1882_v54 = vpack.c.bf16 %v743_v53, %v742_v52  ;;  %v1891_v4 = vpack.c.bf16 %v826_v3, %v825_v2 }
 0x253   : > { %1883 = vmatpush3.bf16.xpose.msra.mxu1 %v1882_v54 }
 0x254   : > { %1884 = vmatprep.subr.bf16.mxu1 %v2339_v34 }
 0x25b   : > { %1886 = vmatpush3.bf16.xpose.msra.mxu1 %v1885_v58 }
 0x25c   : > { %1887 = vmatprep.subr.bf16.mxu1 %v2339_v34 }
 0x262   : > { %1837 = vmatmul.mubr.f32.vlgmr.msra.gmra.mrb[4].mxu1 %v676_v62 }
 0x263   : > { %1889 = vmatpush3.bf16.msra.mxu1 %v1888_v63  ;;  %1847 = vmatprep.mubr.msk.f32.mxu1 %vm2338_vm0, %v2327_v0 }
 0x264   : > { %1890 = vmatprep.subr.bf16.mxu1 %v2339_v34 }
 0x267   : > { %1892 = vmatpush3.bf16.msra.mxu1 %v1891_v4 }
 0x268   : > { %1893 = vmatprep.subr.bf16.mxu1 %v2339_v34 }
 0x335   : > { %v813_v6 = vpop.f32.mrb[4].mxu1 }
 0x336   : > { %v814_v7 = vadd.f32 %v813_v6, %v746_v5  ;;  %v1838_v8 = vpop.f32.mrb[5].mxu1 }
 0x338   : > { %v817_v9 = vsel %vm730_vm1, %v814_v7, -inf }
 0x339   : > { %818 = vmax.xlane.f32.xlu0 %v817_v9 }
 0x3c6   : > { %v819_v12 = vpop.xlane.xlu0 %818 }
 0x3c7   : > { %v820_v13 = vsub.f32 %v814_v7, %v819_v12 }
 0x3c9   : > { %v821_v14 = vmul.f32 1.442695, %v820_v13 }
 0x3cb   : > { %2049 = vpow2.f32 %v821_v14 }
 0x3d5   : > { %v2050_v20 = vpop.eup %2049 }
 0x3d6   : > { %1848 = vmatmul.mubr.msk.f32.vlgmr.msra.gmra.mrb[6].mxu1 %vm730_vm1, %v2050_v20 }
 0x3d7   : > { %1895 = vmatpush3.bf16.msra.mxu1 %v1894_v17  ;;  %1858 = vmatprep.mubr.msk.f32.mxu1 %vm2338_vm0, %v2327_v0 }
 0x3d8   : > { %1896 = vmatprep.subr.bf16.mxu1 %v2339_v34 }
 0x3db   : > { %1898 = vmatpush3.bf16.msra.mxu1 %v1897_v21 }
 0x3de   : > { %1859 = vmatmul.mubr.msk.f32.vlgmr.msra.gmra.mrb[8].mxu1 %vm730_vm1, %v2050_v20 }
 0x4a9   : > { %v896_v29 = vpop.f32.mrb[6].mxu1 }
 0x4aa   : > { %v1849_v30 = vpop.f32.mrb[7].mxu1 }
 0x4b1   : > { %v970_v31 = vpop.f32.mrb[8].mxu1 }
 0x4b2   : > { %2051 = vrcp.f32 %v970_v31  ;;  %v1860_v32 = vpop.f32.mrb[9].mxu1 }
 0x4bc   : > { %v2052_v33 = vpop.eup %2051 }
 0x4bd   : > { %v975_v34 = vmul.f32 %v2052_v33, %v896_v29 }
 0x4bf   : > { %v976_v35 = vpack.c.bf16 %v975_v34, %v975_v34 }
 0x4c1   : > { %1878 = vmatmul.mubr.bf16.vlgmr.msra.gmra.mrb[4].mxu0 %v976_v35 }
 0x594   : > { %v1082_v40 = vpop.f32.mrb[4].mxu0 }
 0x595   : > { %v1083_v41 = vadd.f32 %v1711_v38, %v1082_v40  ;;  %v1879_v42 = vpop.f32.mrb[5].mxu0 }
 0x596   : > { %v1085_v43 = vpop.f32.mrb[6].mxu0 }
 0x597   : > { %v1880_v44 = vpop.f32.mrb[7].mxu0  ;;  %v2710_v0 = vadd.f32 %v1083_v41, %v2644_v1 }
 0x599   : > { %v1089_v45 = vmul.f32 %v2710_v0, %v2710_v0 }
 0x59b   : > { %1090 = vadd.xlane.f32.xlu1 %v1089_v45 }
 0x59c   : > { %2222 = shalt.err (!%p2219_p11)  }
 0x59d   : > { %s2223_s16 = scalar_lea.vmem %s451_s11, 4096  ;;  %p2228_p5 = scmp.lt.s32.totalorder %s451_s11, %s451_s11 }
 0x59e   : > { %p2224_p12 = scmp.ne.s32.totalorder %s451_s11, %s2223_s16  ;;  %p2229_p7 = scmp.lt.s32.totalorder %s2223_s16, %s2223_s16 }
 0x5a0   : > { %p2230_p4 = por %p2229_p7, %p2228_p5 }
 0x5a2   : > { %p2231_p1 = pnand %p2230_p4, %p2224_p12 }
 0x5a4   : > { %2234 = shalt.err (!%p2231_p1)  }
 0x5a5   : > { %453 = dma.hbm_to_vmem [thread:$0]  %s2819_s10, 4096, %s451_s11, [#allocation6 + $0x1] }
 0x5a6   : > { %s2851_s5 = sshll.u32 %s2611_s2, 3 }
 0x5a7   : > { %s2731_s30 = scalar_lea.vmem [#allocation16], %s2851_s5 }
 0x628   : > { %v1091_v1 = vpop.xlane.xlu1 %1090 }
 0x629   : > { %v1092_v46 = vmul.f32 0.0078125, %v1091_v1 }
 0x62b   : > { %v1093_v47 = vadd.f32 1.1920929e-07, %v1092_v46 }
 0x62d   : > { %2053 = vrsqrt.f32 %v1093_v47 }
 0x637   : > { %v2054_v48 = vpop.eup %2053 }
 0x638   : > { %v1095_v49 = vmul.f32 %v2054_v48, %v2710_v0 }
 0x63a   : > { %v2727_v50 = vpack.c.bf16 %v1095_v49, %v1095_v49 }
 0x63b   : > { %2291 = dma.done.wait [#allocation6], 8192 }
 0x63c   : > { %2292 = vsyncadd [#allocation6], 4294959104 }
 0x63d   : > { %2293 = dma.done.wait [#allocation6 + $0x1], 4096 }
 0x63e   : > { %2294 = vsyncadd [#allocation6 + $0x1], 4294963200  ;;  %1243 = vmatprep.mubr.bf16.mxu1 %v2337_v25  ;;  %1284 = vmatprep.mubr.bf16.mxu0 %v2337_v25  ;;  %v1106_v51 = vld [vmem:[#allocation2 + $0x8] sm:$0xff]  ;;  %v1108_v52 = vld [vmem:[#allocation2 + $0x18] sm:$0xff]  ;;  %s1726_s15 = sshll.u32 %s2423_s23, 7  ;;  %s1546_s25 = sshll.u32 %s2731_s30, 4  ;;  %s2766_s25 = int_to_ptr.vmem [resolvable:$true] %s1546_s25 }
 0x63f   : > { %v1105_v53 = vld [vmem:[#allocation2] sm:$0xff]  ;;  %1211 = vmatprep.subr.bf16.mxu1 %v1106_v51  ;;  %1252 = vmatprep.subr.bf16.mxu0 %v1108_v52  ;;  %v1107_v54 = vld [vmem:[#allocation2 + $0x10] sm:$0xff]  ;;  %v1114_v55 = vld [vmem:[#allocation2 + $0x48] sm:$0xff]  ;;  %s2852_s29 = sld [smem:[#allocation34_spill]]  ;;  %s1533_s16 = scalar_lea.sflag [#allocation9], %s2611_s2 }
 0x640   : > { %v1116_v56 = vld [vmem:[#allocation2 + $0x58] sm:$0xff]  ;;  %1212 = vmatpush1.bf16.msra.mxu1 %v1105_v53  ;;  %1253 = vmatpush1.bf16.msra.mxu0 %v1107_v54  ;;  %v1113_v58 = vld [vmem:[#allocation2 + $0x40] sm:$0xff]  ;;  %v1115_v59 = vld [vmem:[#allocation2 + $0x50] sm:$0xff]  ;;  %s2235_s14 = scalar_lea.vmem %s2766_s25, 128  ;;  %p2853_p9 = scmp.ne.s32.totalorder %s2842_s28, 0 }
 0x641   : > { %1213 = vmatprep.subr.bf16.mxu1 %v1114_v55  ;;  %1254 = vmatprep.subr.bf16.mxu0 %v1116_v56  ;;  %v1122_v60 = vld [vmem:[#allocation2 + $0x88] sm:$0xff]  ;;  %v1124_v61 = vld [vmem:[#allocation2 + $0x98] sm:$0xff]  ;;  %v1121_v62 = vld [vmem:[#allocation2 + $0x80] sm:$0xff]  ;;  %p2236_p3 = scmp.ne.s32.totalorder %s2766_s25, %s2235_s14  ;;  %s2341_s23 = smov [#allocation16]  }
 0x642   : > { %v1123_v63 = vld [vmem:[#allocation2 + $0x90] sm:$0xff]  ;;  %v1130_v2 = vld [vmem:[#allocation2 + $0xc8] sm:$0xff]  ;;  %v1132_v3 = vld [vmem:[#allocation2 + $0xd8] sm:$0xff]  ;;  %s2239_s0 = sshll.u32 %s2341_s23, 4  ;;  %s2240_s0 = int_to_ptr.vmem [resolvable:$false] %s2239_s0 }
 0x643   : > { %v1129_v4 = vld [vmem:[#allocation2 + $0xc0] sm:$0xff]  ;;  %v1131_v5 = vld [vmem:[#allocation2 + $0xd0] sm:$0xff]  ;;  %v1138_v6 = vld [vmem:[#allocation2 + $0x108] sm:$0xff]  ;;  %p2237_p13 = pnand %p2236_p3, %p2853_p9  ;;  %s2241_s5 = scalar_lea.vmem %s2240_s0, 256 }
 0x644   : > { %1214 = vmatpush1.bf16.msra.mxu1 %v1113_v58  ;;  %1255 = vmatpush1.bf16.msra.mxu0 %v1115_v59  ;;  %v1140_v7 = vld [vmem:[#allocation2 + $0x118] sm:$0xff]  ;;  %v1137_v8 = vld [vmem:[#allocation2 + $0x100] sm:$0xff]  ;;  %v1139_v9 = vld [vmem:[#allocation2 + $0x110] sm:$0xff]  ;;  %p2242_p2 = scmp.lt.s32.totalorder %s2766_s25, %s2240_s0  ;;  %p2243_p8 = scmp.lt.s32.totalorder %s2241_s5, %s2235_s14 }
 0x645   : > { %1215 = vmatprep.subr.bf16.mxu1 %v1122_v60  ;;  %1256 = vmatprep.subr.bf16.mxu0 %v1124_v61  ;;  %v1146_v10 = vld [vmem:[#allocation2 + $0x148] sm:$0xff]  ;;  %v1148_v11 = vld [vmem:[#allocation2 + $0x158] sm:$0xff]  ;;  %v1145_v12 = vld [vmem:[#allocation2 + $0x140] sm:$0xff]  ;;  %s2764_s27 = scalar_lea.hbm %s2852_s29, %s1726_s15  ;;  %p2238_p0 = pneg %p2237_p13 }
 0x646   : > { %v1147_v13 = vld [vmem:[#allocation2 + $0x150] sm:$0xff]  ;;  %v1154_v14 = vld [vmem:[#allocation2 + $0x188] sm:$0xff]  ;;  %v1156_v15 = vld [vmem:[#allocation2 + $0x198] sm:$0xff]  ;;  %p2244_p6 = por %p2243_p8, %p2242_p2 }
 0x647   : > { %v1153_v16 = vld [vmem:[#allocation2 + $0x180] sm:$0xff]  ;;  %v1155_v17 = vld [vmem:[#allocation2 + $0x190] sm:$0xff]  ;;  %v1162_v18 = vld [vmem:[#allocation2 + $0x1c8] sm:$0xff] }
 0x648   : > { %1216 = vmatpush1.bf16.msra.mxu1 %v1121_v62  ;;  %1257 = vmatpush1.bf16.msra.mxu0 %v1123_v63  ;;  %v1164_v19 = vld [vmem:[#allocation2 + $0x1d8] sm:$0xff]  ;;  %v1161_v20 = vld [vmem:[#allocation2 + $0x1c0] sm:$0xff]  ;;  %v1163_v21 = vld [vmem:[#allocation2 + $0x1d0] sm:$0xff]  ;;  %p2245_p10 = pnand %p2244_p6, %p2238_p0 }
 0x649   : > { %1217 = vmatprep.subr.bf16.mxu1 %v1130_v2  ;;  %1258 = vmatprep.subr.bf16.mxu0 %v1132_v3  ;;  %v1110_v22 = vld [vmem:[#allocation2 + $0x28] sm:$0xff]  ;;  %v1112_v23 = vld [vmem:[#allocation2 + $0x38] sm:$0xff]  ;;  %v1109_v24 = vld [vmem:[#allocation2 + $0x20] sm:$0xff] }
 0x64a   : > { %v1111_v26 = vld [vmem:[#allocation2 + $0x30] sm:$0xff]  ;;  %v1118_v27 = vld [vmem:[#allocation2 + $0x68] sm:$0xff]  ;;  %v1120_v28 = vld [vmem:[#allocation2 + $0x78] sm:$0xff] }
 0x64b   : > { %v1117_v29 = vld [vmem:[#allocation2 + $0x60] sm:$0xff]  ;;  %v1119_v30 = vld [vmem:[#allocation2 + $0x70] sm:$0xff]  ;;  %v1126_v31 = vld [vmem:[#allocation2 + $0xa8] sm:$0xff] }
 0x64c   : > { %1218 = vmatpush1.bf16.msra.mxu1 %v1129_v4  ;;  %1259 = vmatpush1.bf16.msra.mxu0 %v1131_v5  ;;  %v1128_v32 = vld [vmem:[#allocation2 + $0xb8] sm:$0xff]  ;;  %v1125_v33 = vld [vmem:[#allocation2 + $0xa0] sm:$0xff]  ;;  %v1127_v34 = vld [vmem:[#allocation2 + $0xb0] sm:$0xff] }
 0x64d   : > { %1219 = vmatprep.subr.bf16.mxu1 %v1138_v6  ;;  %1260 = vmatprep.subr.bf16.mxu0 %v1140_v7  ;;  %v1134_v35 = vld [vmem:[#allocation2 + $0xe8] sm:$0xff]  ;;  %v1136_v38 = vld [vmem:[#allocation2 + $0xf8] sm:$0xff]  ;;  %v1133_v40 = vld [vmem:[#allocation2 + $0xe0] sm:$0xff] }
 0x64e   : > { %v1135_v41 = vld [vmem:[#allocation2 + $0xf0] sm:$0xff]  ;;  %v1142_v42 = vld [vmem:[#allocation2 + $0x128] sm:$0xff]  ;;  %v1144_v43 = vld [vmem:[#allocation2 + $0x138] sm:$0xff] }
 0x64f   : > { %v1143_v44 = vld [vmem:[#allocation2 + $0x130] sm:$0xff]  ;;  %v1150_v45 = vld [vmem:[#allocation2 + $0x168] sm:$0xff]  ;;  %v1152_v1 = vld [vmem:[#allocation2 + $0x178] sm:$0xff] }
 0x650   : > { %1220 = vmatpush1.bf16.msra.mxu1 %v1137_v8  ;;  %1261 = vmatpush1.bf16.msra.mxu0 %v1139_v9  ;;  %v1149_v46 = vld [vmem:[#allocation2 + $0x160] sm:$0xff]  ;;  %v1151_v47 = vld [vmem:[#allocation2 + $0x170] sm:$0xff]  ;;  %v1158_v48 = vld [vmem:[#allocation2 + $0x1a8] sm:$0xff] }
 0x651   : > { %1221 = vmatprep.subr.bf16.mxu1 %v1146_v10  ;;  %1262 = vmatprep.subr.bf16.mxu0 %v1148_v11  ;;  %v1160_v49 = vld [vmem:[#allocation2 + $0x1b8] sm:$0xff]  ;;  %v1157_v51 = vld [vmem:[#allocation2 + $0x1a0] sm:$0xff]  ;;  %v1159_v52 = vld [vmem:[#allocation2 + $0x1b0] sm:$0xff] }
 0x652   : > { %v1166_v53 = vld [vmem:[#allocation2 + $0x1e8] sm:$0xff]  ;;  %v1168_v54 = vld [vmem:[#allocation2 + $0x1f8] sm:$0xff]  ;;  %v1165_v55 = vld [vmem:[#allocation2 + $0x1e0] sm:$0xff] }
 0x653   : > { %v1167_v56 = vld [vmem:[#allocation2 + $0x1f0] sm:$0xff]  ;;  %v1419_v58 = vld [vmem:[#allocation3 + $0x40] sm:$0xff]  ;;  %v1420_v62 = vld [vmem:[#allocation3 + $0x48] sm:$0xff] }
 0x654   : > { %1222 = vmatpush1.bf16.msra.mxu1 %v1145_v12  ;;  %1263 = vmatpush1.bf16.msra.mxu0 %v1147_v13  ;;  %v1435_v59 = vld [vmem:[#allocation3 + $0xc0] sm:$0xff]  ;;  %v1436_v63 = vld [vmem:[#allocation3 + $0xc8] sm:$0xff]  ;;  %v1421_v4 = vld [vmem:[#allocation3 + $0x50] sm:$0xff] }
 0x655   : > { %1223 = vmatprep.subr.bf16.mxu1 %v1154_v14  ;;  %1264 = vmatprep.subr.bf16.mxu0 %v1156_v15  ;;  %v1411_v60 = vld [vmem:[#allocation3] sm:$0xff]  ;;  %v1412_v2 = vld [vmem:[#allocation3 + $0x8] sm:$0xff]  ;;  %v1437_v5 = vld [vmem:[#allocation3 + $0xd0] sm:$0xff] }
 0x656   : > { %v1427_v61 = vld [vmem:[#allocation3 + $0x80] sm:$0xff]  ;;  %v1428_v3 = vld [vmem:[#allocation3 + $0x88] sm:$0xff]  ;;  %v1429_v6 = vld [vmem:[#allocation3 + $0x90] sm:$0xff] }
 0x657   : > { %v1422_v7 = vld [vmem:[#allocation3 + $0x58] sm:$0xff]  ;;  %v1423_v11 = vld [vmem:[#allocation3 + $0x60] sm:$0xff]  ;;  %v1424_v15 = vld [vmem:[#allocation3 + $0x68] sm:$0xff] }
 0x658   : > { %1224 = vmatpush1.bf16.msra.mxu1 %v1153_v16  ;;  %1265 = vmatpush1.bf16.msra.mxu0 %v1155_v17  ;;  %v1438_v8 = vld [vmem:[#allocation3 + $0xd8] sm:$0xff]  ;;  %v1439_v12 = vld [vmem:[#allocation3 + $0xe0] sm:$0xff]  ;;  %v1440_v16 = vld [vmem:[#allocation3 + $0xe8] sm:$0xff] }
 0x659   : > { %1225 = vmatprep.subr.bf16.mxu1 %v1162_v18  ;;  %1266 = vmatprep.subr.bf16.mxu0 %v1164_v19  ;;  %v1414_v9 = vld [vmem:[#allocation3 + $0x18] sm:$0xff]  ;;  %v1415_v13 = vld [vmem:[#allocation3 + $0x20] sm:$0xff]  ;;  %v1416_v17 = vld [vmem:[#allocation3 + $0x28] sm:$0xff] }
 0x65a   : > { %v1430_v10 = vld [vmem:[#allocation3 + $0x98] sm:$0xff]  ;;  %v1431_v14 = vld [vmem:[#allocation3 + $0xa0] sm:$0xff]  ;;  %v1432_v18 = vld [vmem:[#allocation3 + $0xa8] sm:$0xff] }
 0x65b   : > { %v1425_v19 = vld [vmem:[#allocation3 + $0x70] sm:$0xff] }
 0x65c   : > { %1226 = vmatpush1.bf16.msra.mxu1 %v1161_v20  ;;  %1267 = vmatpush1.bf16.msra.mxu0 %v1163_v21  ;;  %v1441_v20 = vld [vmem:[#allocation3 + $0xf0] sm:$0xff] }
 0x65d   : > { %1293 = vmatprep.subr.bf16.mxu1 %v1110_v22  ;;  %1334 = vmatprep.subr.bf16.mxu0 %v1112_v23  ;;  %v1417_v21 = vld [vmem:[#allocation3 + $0x30] sm:$0xff]  ;;  %v1426_v23 = vld [vmem:[#allocation3 + $0x78] sm:$0xff] }
 0x65e   : > { %v1433_v22 = vld [vmem:[#allocation3 + $0xb0] sm:$0xff] }
 0x65f   : > { %1244 = vmatmul.mubr.bf16.vlgmr.msra.gmra.mrb[12].mxu1 %v2727_v50  ;;  %1285 = vmatmul.mubr.bf16.vlgmr.msra.gmra.mrb[8].mxu0 %v2727_v50 }
 0x660   : > { %1294 = vmatpush1.bf16.msra.mxu1 %v1109_v24  ;;  %1335 = vmatpush1.bf16.msra.mxu0 %v1111_v26  ;;  %v1442_v24 = vld [vmem:[#allocation3 + $0xf8] sm:$0xff] }
 0x661   : > { %1295 = vmatprep.subr.bf16.mxu1 %v1118_v27  ;;  %1336 = vmatprep.subr.bf16.mxu0 %v1120_v28  ;;  %v1418_v26 = vld [vmem:[#allocation3 + $0x38] sm:$0xff]  ;;  %v1169_v28 = vld [vmem:[%s2816_s7] sm:$0xff] }
 0x662   : > { %1325 = vmatprep.mubr.bf16.mxu1 %v2337_v25  ;;  %1366 = vmatprep.mubr.bf16.mxu0 %v2337_v25  ;;  %v1141_v25 = vld [vmem:[#allocation2 + $0x120] sm:$0xff]  ;;  %v1434_v27 = vld [vmem:[#allocation3 + $0xb8] sm:$0xff] }
 0x664   : > { %1296 = vmatpush1.bf16.msra.mxu1 %v1117_v29  ;;  %1337 = vmatpush1.bf16.msra.mxu0 %v1119_v30  ;;  %v1185_v29 = vsub.s32 3, %v2665_v36  ;;  %v1174_v30 = vrot.slane %v1169_v28, %v500_v57 }
 0x665   : > { %1297 = vmatprep.subr.bf16.mxu1 %v1126_v31  ;;  %1338 = vmatprep.subr.bf16.mxu0 %v1128_v32  ;;  %v1182_v31 = vrot.slane %v1169_v28, %v508_v37  ;;  %v1178_v32 = vrot.slane %v1169_v28, %v504_v39 }
 0x668   : > { %1298 = vmatpush1.bf16.msra.mxu1 %v1125_v33  ;;  %1339 = vmatpush1.bf16.msra.mxu0 %v1127_v34  ;;  %v1186_v33 = vrot.slane %v1169_v28, %v1185_v29 }
 0x669   : > { %1299 = vmatprep.subr.bf16.mxu1 %v1134_v35  ;;  %1340 = vmatprep.subr.bf16.mxu0 %v1136_v38 }
 0x66c   : > { %1300 = vmatpush1.bf16.msra.mxu1 %v1133_v40  ;;  %1341 = vmatpush1.bf16.msra.mxu0 %v1135_v41 }
 0x66d   : > { %1301 = vmatprep.subr.bf16.mxu1 %v1142_v42  ;;  %1342 = vmatprep.subr.bf16.mxu0 %v1144_v43 }
 0x670   : > { %1302 = vmatpush1.bf16.msra.mxu1 %v1141_v25  ;;  %1343 = vmatpush1.bf16.msra.mxu0 %v1143_v44 }
 0x671   : > { %1303 = vmatprep.subr.bf16.mxu1 %v1150_v45  ;;  %1344 = vmatprep.subr.bf16.mxu0 %v1152_v1 }
 0x674   : > { %1304 = vmatpush1.bf16.msra.mxu1 %v1149_v46  ;;  %1345 = vmatpush1.bf16.msra.mxu0 %v1151_v47 }
 0x675   : > { %1305 = vmatprep.subr.bf16.mxu1 %v1158_v48  ;;  %1346 = vmatprep.subr.bf16.mxu0 %v1160_v49 }
 0x678   : > { %1306 = vmatpush1.bf16.msra.mxu1 %v1157_v51  ;;  %1347 = vmatpush1.bf16.msra.mxu0 %v1159_v52 }
 0x679   : > { %1307 = vmatprep.subr.bf16.mxu1 %v1166_v53  ;;  %1348 = vmatprep.subr.bf16.mxu0 %v1168_v54 }
 0x67c   : > { %1308 = vmatpush1.bf16.msra.mxu1 %v1165_v55  ;;  %1349 = vmatpush1.bf16.msra.mxu0 %v1167_v56 }
 0x67d   : > { %1764 = vmatprep.subr.bf16.mxu1 %v1419_v58  ;;  %1786 = vmatprep.subr.bf16.mxu0 %v1435_v59  ;;  %v1189_v58 = vsub.s32 4, %v2665_v36  ;;  %v1197_v59 = vsub.s32 6, %v2665_v36 }
 0x67f   : > { %1326 = vmatmul.mubr.bf16.vlgmr.msra.gmra.mrb[16].mxu1 %v2727_v50  ;;  %1367 = vmatmul.mubr.bf16.vlgmr.msra.gmra.mrb[12].mxu0 %v2727_v50  ;;  %v1413_v50 = vld [vmem:[#allocation3 + $0x10] sm:$0xff] }
 0x680   : > { %1765 = vmatpush3.bf16.msra.mxu1 %v1411_v60  ;;  %1787 = vmatpush3.bf16.msra.mxu0 %v1427_v61  ;;  %v1193_v60 = vsub.s32 5, %v2665_v36  ;;  %v1201_v61 = vsub.s32 7, %v2665_v36 }
 0x681   : > { %1766 = vmatprep.subr.bf16.mxu1 %v1420_v62  ;;  %1788 = vmatprep.subr.bf16.mxu0 %v1436_v63 }
 0x684   : > { %1767 = vmatpush3.bf16.msra.mxu1 %v1412_v2  ;;  %1789 = vmatpush3.bf16.msra.mxu0 %v1428_v3  ;;  %v1190_v2 = vrot.slane %v1169_v28, %v1189_v58  ;;  %v1198_v3 = vrot.slane %v1169_v28, %v1197_v59 }
 0x685   : > { %1768 = vmatprep.subr.bf16.mxu1 %v1421_v4  ;;  %1790 = vmatprep.subr.bf16.mxu0 %v1437_v5  ;;  %v1194_v5 = vrot.slane %v1169_v28, %v1193_v60 }
 0x688   : > { %1769 = vmatpush3.bf16.msra.mxu1 %v1413_v50  ;;  %1791 = vmatpush3.bf16.msra.mxu0 %v1429_v6  ;;  %v1202_v50 = vrot.slane %v1169_v28, %v1201_v61 }
 0x689   : > { %1770 = vmatprep.subr.bf16.mxu1 %v1422_v7  ;;  %1792 = vmatprep.subr.bf16.mxu0 %v1438_v8 }
 0x68c   : > { %1771 = vmatpush3.bf16.msra.mxu1 %v1414_v9  ;;  %1793 = vmatpush3.bf16.msra.mxu0 %v1430_v10 }
 0x68d   : > { %1772 = vmatprep.subr.bf16.mxu1 %v1423_v11  ;;  %1794 = vmatprep.subr.bf16.mxu0 %v1439_v12 }
 0x690   : > { %1773 = vmatpush3.bf16.msra.mxu1 %v1415_v13  ;;  %1795 = vmatpush3.bf16.msra.mxu0 %v1431_v14 }
 0x691   : > { %1774 = vmatprep.subr.bf16.mxu1 %v1424_v15  ;;  %1796 = vmatprep.subr.bf16.mxu0 %v1440_v16 }
 0x694   : > { %1775 = vmatpush3.bf16.msra.mxu1 %v1416_v17  ;;  %1797 = vmatpush3.bf16.msra.mxu0 %v1432_v18 }
 0x695   : > { %1776 = vmatprep.subr.bf16.mxu1 %v1425_v19  ;;  %1798 = vmatprep.subr.bf16.mxu0 %v1441_v20 }
 0x698   : > { %1777 = vmatpush3.bf16.msra.mxu1 %v1417_v21  ;;  %1799 = vmatpush3.bf16.msra.mxu0 %v1433_v22 }
 0x699   : > { %1778 = vmatprep.subr.bf16.mxu1 %v1426_v23  ;;  %1800 = vmatprep.subr.bf16.mxu0 %v1442_v24 }
 0x69c   : > { %1779 = vmatpush3.bf16.msra.mxu1 %v1418_v26  ;;  %1801 = vmatpush3.bf16.msra.mxu0 %v1434_v27 }
 0x732   : > { %v1245_v34 = vpop.f32.mrb[12].mxu1  ;;  %v1286_v35 = vpop.f32.mrb[8].mxu0 }
 0x733   : > { %v1246_v38 = vadd.f32 %v1245_v34, %v1174_v30  ;;  %v1287_v40 = vadd.f32 %v1286_v35, %v1182_v31  ;;  %v1247_v41 = vpop.f32.mrb[13].mxu1  ;;  %v1288_v42 = vpop.f32.mrb[9].mxu0 }
 0x734   : > { %v1248_v43 = vadd.f32 %v1247_v41, %v1178_v32  ;;  %v1289_v25 = vadd.f32 %v1288_v42, %v1186_v33  ;;  %v1249_v44 = vpop.f32.mrb[14].mxu1  ;;  %v1290_v45 = vpop.f32.mrb[10].mxu0  ;;  %v1724_v33 = vld [vmem:[%s2817_s8] ss:$0 sm:$0xff] }
 0x735   : > { %v1720_v1 = vmul.f32 -1.442695, %v1246_v38  ;;  %v1722_v46 = vmul.f32 -1.442695, %v1287_v40  ;;  %v1250_v57 = vpop.f32.mrb[15].mxu1  ;;  %v1291_v47 = vpop.f32.mrb[11].mxu0 }
 0x736   : > { %v1721_v48 = vmul.f32 -1.442695, %v1248_v43  ;;  %v1723_v37 = vmul.f32 -1.442695, %v1289_v25 }
 0x737   : > { %2055 = vpow2.f32 %v1720_v1 }
 0x738   : > { %2057 = vpow2.f32 %v1722_v46 }
 0x739   : > { %2059 = vpow2.f32 %v1721_v48 }
 0x73a   : > { %2061 = vpow2.f32 %v1723_v37 }
 0x741   : > { %v2056_v39 = vpop.eup %2055 }
 0x742   : > { %v2058_v49 = vpop.eup %2057  ;;  %v1387_v51 = vadd.f32 1.0, %v2056_v39 }
 0x743   : > { %v2060_v52 = vpop.eup %2059  ;;  %v1389_v53 = vadd.f32 1.0, %v2058_v49 }
 0x744   : > { %v2062_v54 = vpop.eup %2061  ;;  %2063 = vrcp.f32 %v1387_v51  ;;  %v1388_v55 = vadd.f32 1.0, %v2060_v52 }
 0x745   : > { %2065 = vrcp.f32 %v1389_v53  ;;  %v1390_v56 = vadd.f32 1.0, %v2062_v54 }
 0x746   : > { %2067 = vrcp.f32 %v1388_v55 }
 0x747   : > { %2069 = vrcp.f32 %v1390_v56 }
 0x74e   : > { %v2064_v62 = vpop.eup %2063 }
 0x74f   : > { %v2066_v63 = vpop.eup %2065  ;;  %v1399_v9 = vmul.f32 %v2064_v62, %v1246_v38 }
 0x750   : > { %v2068_v4 = vpop.eup %2067  ;;  %v1401_v10 = vmul.f32 %v2066_v63, %v1287_v40 }
 0x751   : > { %v2070_v6 = vpop.eup %2069  ;;  %v1400_v15 = vmul.f32 %v2068_v4, %v1248_v43 }
 0x752   : > { %v1327_v7 = vpop.f32.mrb[16].mxu1  ;;  %v1368_v8 = vpop.f32.mrb[12].mxu0  ;;  %v1402_v16 = vmul.f32 %v2070_v6, %v1289_v25 }
 0x753   : > { %v1328_v11 = vadd.f32 %v1327_v7, %v1190_v2  ;;  %v1369_v12 = vadd.f32 %v1368_v8, %v1198_v3  ;;  %v1329_v13 = vpop.f32.mrb[17].mxu1  ;;  %v1370_v14 = vpop.f32.mrb[13].mxu0 }
 0x754   : > { %v1330_v17 = vadd.f32 %v1329_v13, %v1194_v5  ;;  %v1371_v36 = vadd.f32 %v1370_v14, %v1202_v50  ;;  %v1331_v18 = vpop.f32.mrb[18].mxu1  ;;  %v1372_v19 = vpop.f32.mrb[14].mxu0 }
 0x755   : > { %v1403_v20 = vmul.f32 %v1399_v9, %v1328_v11  ;;  %v1405_v21 = vmul.f32 %v1401_v10, %v1369_v12  ;;  %v1332_v22 = vpop.f32.mrb[19].mxu1  ;;  %v1373_v23 = vpop.f32.mrb[15].mxu0 }
 0x756   : > { %v1404_v24 = vmul.f32 %v1400_v15, %v1330_v17  ;;  %v1406_v26 = vmul.f32 %v1402_v16, %v1371_v36 }
 0x757   : > { %v1407_v29 = vpack.c.bf16 %v1403_v20, %v1403_v20  ;;  %v1409_v30 = vpack.c.bf16 %v1405_v21, %v1405_v21 }
 0x758   : > { %v1408_v27 = vpack.c.bf16 %v1404_v24, %v1404_v24  ;;  %v1410_v28 = vpack.c.bf16 %v1406_v26, %v1406_v26 }
 0x75a   : > { %1482 = vmatprep.mubr.bf16.mxu1 %v1408_v27  ;;  %1522 = vmatprep.mubr.bf16.mxu0 %v1410_v28 }
 0x75b   : > { %1483 = vmatmul.mubr.bf16.vlgmr.msra.gmra.mrb[20].mxu1 %v1407_v29  ;;  %1523 = vmatmul.mubr.bf16.vlgmr.msra.gmra.mrb[16].mxu0 %v1409_v30 }
 0x82e   : > { %v1780_v31 = vpop.f32.mrb[20].mxu1  ;;  %v1802_v32 = vpop.f32.mrb[16].mxu0 }
 0x82f   : > { %v1781_v34 = vpop.f32.mrb[21].mxu1  ;;  %v1803_v35 = vpop.f32.mrb[17].mxu0 }
 0x830   : > { %v1782_v38 = vadd.f32 %v1781_v34, %v1780_v31  ;;  %v1804_v40 = vadd.f32 %v1803_v35, %v1802_v32  ;;  %v1783_v41 = vpop.f32.mrb[22].mxu1  ;;  %v1805_v42 = vpop.f32.mrb[18].mxu0 }
 0x831   : > { %v1784_v43 = vpop.f32.mrb[23].mxu1  ;;  %v1806_v25 = vpop.f32.mrb[19].mxu0 }
 0x832   : > { %v1485_v44 = vadd.f32 %v1782_v38, %v1724_v33 }
 0x834   : > { %v1525_v45 = vadd.f32 %v1804_v40, %v1485_v44 }
 0x836   : > { %v1530_v1 = vadd.f32 %v1525_v45, %v2710_v0 }
 0x838   : > { %1531 = vst [vmem:[%s2731_s30] sm:$0xff] %v1530_v1 }
 0x839   : > { %2248 = shalt.err (!%p2245_p10)
}
 0x83a   : > { %s2249_s2 = scalar_lea.hbm %s2764_s27, 128  ;;  %s2253_s24 = scalar_lea.hbm %s2852_s29, 256 }
 0x83b   : > { %p2250_p11 = scmp.ne.s32.totalorder %s2764_s27, %s2249_s2  ;;  %p2254_p7 = scmp.lt.u32.totalorder %s2764_s27, %s2852_s29 }
 0x83c   : > { %p2255_p4 = scmp.lt.u32.totalorder %s2253_s24, %s2249_s2  ;;  %p2257_p3 = scmp.lt.u32.totalorder %s2249_s2, %s2764_s27 }
 0x83d   : > { %p2251_p12 = pnand %p2250_p11, %p2853_p9 }
 0x83e   : > { %p2256_p1 = por %p2255_p4, %p2254_p7 }
 0x83f   : > { %p2252_p5 = pneg %p2251_p12 }
 0x840   : > { %p2258_p13 = por %p2257_p3, %p2256_p1 }
 0x842   : > { %p2259_p0 = pnand %p2258_p13, %p2252_p5 }
 0x844   : > { %2262 = shalt.err (!%p2259_p0)
}
 0x845   : > { %1917 = dma.vmem_to_hbm [thread:$0]  (%p2853_p9), %s2766_s25, 128, %s2764_s27, %s1533_s16  }
 0x846 PF: > { %s1558_s15 = sand.u32 1, %s2301_s17   ;;  %p2854_p2 = scmp.ne.s32.totalorder %s2843_s22, 0 }
 0x847   : > { %p2855_p8 = scmp.ge.s32.totalorder %s2313_s20, 2  ;;  %s1559_s1 = scalar_lea.sflag [#allocation9], %s1558_s15 }
 0x849   : > { %p1937_p6 = pnand %p2855_p8, %p2854_p2 }
 0x84b   : > { %2296 = dma.done.wait (!%p1937_p6), %s1559_s1, 128  }
 0x84c   : > { %2298 = vsyncadd (!%p1937_p6), %s1559_s1, 4294967168  ;;  %p26_p10 = scmp.ge.s32.totalorder %s2535_s12, 4   ;;  %s2856_s17 = smov %s2305_s18 }
 0x84d   : > { %s2857_s18 = smov %s2309_s19  ;;  %s2858_s19 = smov %s2546_s21 }
 0x84e   : > { %s2859_s20 = smov %s2535_s12  ;;  %28 = sbr.rel (!%p26_p10) target bundleno = 14 (0xe), region = 131 }
 0x855   :  { %1564 = vsyncpa [#allocation8], 1 }
 0x856   :  { %1566 = vsyncpa [#allocation8 + $0x1], 1 }
 0x857   :  { %1567 = vsyncpa [#allocation11], 1 }
 0x858   :  { %1568 = vsyncpa [#allocation14], 1 }
 0x859   :  { %1569 = vsyncpa [#allocation9], 1 }
 0x85a   :  { %1571 = vsyncpa [#allocation9 + $0x1], 1 }
 0x85b   :  { %1572 = vsyncmov [#allocation6] }
 0x85e   :  { %s1573_s20 = vpop.sfrf %1572 }
 0x85f   :  { %p1729_p9 = scmp.ne.s32.totalorder %s1573_s20, 0 }
 0x861   :  { %1577 = shalt.err (%p1729_p9)  }
 0x862   :  { %1579 = vsyncmov [#allocation6 + $0x1] }
 0x865   :  { %s1580_s28 = vpop.sfrf %1579 }
 0x866   :  { %p1730_p11 = scmp.ne.s32.totalorder %s1580_s28, 0 }
 0x868   :  { %1584 = shalt.err (%p1730_p11)  }

</bundles_post_ra>
